<compile_context>
chip_gen: v6e
topology: v6e:2x2x1
jax: 0.10.0
libtpu: 0.0.40
codegen_flags: <defaults>
</compile_context>

<pallas_src>
import functools

import numpy as np
import jax
import jax.numpy as jnp
from jax.experimental import pallas as pl
from jax.experimental.pallas import tpu as pltpu

LANE = 128  # lane-dense padded feature width used inside the kernel


def _round_up(x, m):
    return ((x + m - 1) // m) * m


def _gcn_block_kernel(n_rows, s_pad,
                      x_ref, mcol_ref, mrow_ref,
                      w0i_ref, w1i_ref, w0e_ref, w1e_ref,
                      woa_ref, wob_ref, bo_ref,
                      out_ref):
    """One grid step = one block of `seq_blk` padded sequences (n_rows rows)."""
    f32 = jnp.float32
    bf16 = jnp.bfloat16

    def split(a):
        hi = a.astype(bf16)
        lo = (a - hi.astype(f32)).astype(bf16)
        return hi, lo

    def dot(u, v):
        return jnp.dot(u, v, preferred_element_type=f32)

    def mm(a, b):
        # f32-accurate matmul from 3 native-rate bf16 MXU passes (~Precision.HIGH).
        ah, al = split(a)
        bh, bl = split(b)
        return dot(ah, bh) + dot(ah, bl) + dot(al, bh)

    def mm_exact_lhs(a_bf, b):
        # lhs is exactly representable in bf16 (a 0/1 mask) -> 2 passes suffice.
        bh, bl = split(b)
        return dot(a_bf, bh) + dot(a_bf, bl)

    meta_c = mcol_ref[...]                      # (n_rows, 2) int32
    meta_r = mrow_ref[...]                      # (2, n_rows) int32
    grp_col = meta_c[:, 0:1]                    # group label per row (0 = ungrouped/pad)
    sid_col = meta_c[:, 1:2]                    # local seq id per row (-1 = padding)
    grp_row = meta_r[0:1, :]
    sid_row = meta_r[1:2, :]

    # Block-diagonal M_intra: same (non-zero) group within the SAME sequence,
    # plus the diagonal.  Padding rows only hit the diagonal (grp == 0).
    rows = jax.lax.broadcasted_iota(jnp.int32, (n_rows, n_rows), 0)
    cols = jax.lax.broadcasted_iota(jnp.int32, (n_rows, n_rows), 1)
    same = (grp_col == grp_row) & (grp_col != 0) & (sid_col == sid_row)
    m = jnp.where(same | (rows == cols), f32(1.0), f32(0.0))
    m_bf = m.astype(bf16)                       # exact: values are 0/1

    row_sum = jnp.sum(m, axis=1, keepdims=True)          # |group_i| >= 1 always
    valid = sid_col >= 0
    recip = jnp.where(valid, 1.0 / row_sum, f32(0.0))    # 0 on padding rows

    # gcn_intra (2 layers); row normalization folded into the (rows, feat) product.
    x = x_ref[...]
    h = recip * mm_exact_lhs(m_bf, x)
    h = jnp.maximum(mm(h, w0i_ref[...]), 0.0)
    h = recip * mm_exact_lhs(m_bf, h)
    intra = jnp.maximum(mm(h, w1i_ref[...]), 0.0)        # (n_rows, LANE)

    # GPool -> gcn_inter -> GUnpool in exact closed form, batched over the
    # sequences of this block via a 0/1 selection matrix from the seq ids.
    # (A_inter is uniform, so every group row of the inter GCN is identical:
    #  v_p = relu(relu(mean_g_p @ W0) @ W1), inter row i = v_{seq(i)} / |group_i|.)
    p_row = jax.lax.broadcasted_iota(jnp.int32, (s_pad, n_rows), 0)
    p_col = jax.lax.broadcasted_iota(jnp.int32, (n_rows, s_pad), 1)
    sel = jnp.where(sid_row == p_row, f32(1.0), f32(0.0)).astype(bf16)    # (s_pad, n_rows)
    sel_t = jnp.where(sid_col == p_col, f32(1.0), f32(0.0)).astype(bf16)  # (n_rows, s_pad)

    # Stuff a constant 1 into (otherwise zero) lane LANE-1 so the same
    # segment-sum matmul also yields n_group_p = sum_i 1/|group_i| in that lane.
    lane = jax.lax.broadcasted_iota(jnp.int32, (n_rows, LANE), 1)
    intra_aug = jnp.where(lane == LANE - 1, f32(1.0), intra)
    gsum = mm_exact_lhs(sel, recip * intra_aug)            # (s_pad, LANE)
    n_group = gsum[:, LANE - 1:LANE]                       # (s_pad, 1)
    # max(..., 1) only guards phantom/empty sequences (their output is discarded).
    mean_g = gsum * (1.0 / jnp.maximum(n_group, f32(1.0)))

    hg = jnp.maximum(mm(mean_g, w0e_ref[...]), 0.0)
    v = jnp.maximum(mm(hg, w1e_ref[...]), 0.0)             # (s_pad, LANE)

    # out_embedding without the concat:
    #   cat([intra, inter]) @ W_out + b == intra @ W_a + recip * (v[seq] @ W_b) + b
    vb = mm(v, wob_ref[...])                               # (s_pad, LANE)
    inter_rows = mm_exact_lhs(sel_t, vb)                   # (n_rows, LANE)
    out = mm(intra, woa_ref[...]) + recip * inter_rows + bo_ref[...]
    out_ref[...] = out                                     # lane-dense full store


def _pad2(w, rows, cols):
    w = jnp.asarray(w, jnp.float32)
    out = jnp.zeros((rows, cols), jnp.float32)
    return out.at[:w.shape[0], :w.shape[1]].set(w)


def init_params(key, input_dim=40, hidden_dim=72, out_dim=16, gcn_layers=2,
                final_dim=24):
    """Synthetic parameters with the shapes of GCNModule.__init__.

    (PyTorch draws the GCN weights from a unit normal; here they are scaled by
    1/sqrt(fan_in) purely to keep test magnitudes O(1).)
    """
    # TODO(synk): kernel below is specialized to the module's default gcn_layers=2.
    assert gcn_layers == 2
    ks = jax.random.split(key, 6)
    f32 = jnp.float32

    def w(k, din, dout):
        return jax.random.normal(k, (din, dout), f32) / jnp.sqrt(f32(din))

    return dict(
        input_dim=input_dim, hidden_dim=hidden_dim, out_dim=out_dim,
        final_dim=final_dim,
        w0_intra=w(ks[0], input_dim, hidden_dim),
        w1_intra=w(ks[1], hidden_dim, out_dim),
        w0_inter=w(ks[2], out_dim, hidden_dim),   # gcn_inter input_dim == 16 == out_dim
        w1_inter=w(ks[3], hidden_dim, out_dim),
        w_out=w(ks[4], 2 * out_dim, final_dim),
        b_out=0.1 * jax.random.normal(ks[5], (final_dim,), f32),
    )


def gcn_module_forward(params, h_states, seq_start_end, end_pos, end_group,
                       *, target_rows=256):
    """JAX/Pallas equivalent of GCNModule.forward.

    h_states: (batch, input_dim); seq_start_end: list of (start, end) python
    ints; end_pos: (batch, 2) -- unused by the forward pass (same as PyTorch);
    end_group: (batch, 1) integer-valued group labels (0 = ungrouped).
    Returns (sum of sequence lengths, final_dim).
    """
    del end_pos  # GCNModule.forward never reads it (matches the PyTorch code).
    din = params["input_dim"]
    out_dim = params["out_dim"]
    final_dim = params["final_dim"]
    assert out_dim < LANE and int(params["w0_inter"].shape[0]) < LANE

    starts_ends = [(int(s), int(e)) for (s, e) in seq_start_end]
    lens = np.asarray([e - s for (s, e) in starts_ends], np.int64)
    assert (lens > 0).all(), "empty sequences are not supported"
    num_seq = len(lens)
    p_pad = max(8, _round_up(int(lens.max()), 8))

    # Sequences per grid step: aim for ~target_rows MXU rows per step (256-ish
    # fills the v6e/v7x MXU and keeps the n^2 mask small for v7x's 64 MiB VMEM)
    # while keeping >= 2 grid steps so both v7x TensorCores get work.
    seq_blk = max(1, target_rows // p_pad)
    if num_seq >= 2:
        seq_blk = min(seq_blk, (num_seq + 1) // 2)
    seq_blk = min(seq_blk, num_seq)
    num_blk = -(-num_seq // seq_blk)
    n_rows = seq_blk * p_pad                 # rows per grid step (multiple of 8)
    r_total = num_blk * n_rows
    s_pad = max(8, _round_up(seq_blk, 8))    # padded #sequences for the pooling matmuls

    # Row bookkeeping (host numpy; becomes ONE gather + ONE scatter in XLA).
    src = np.concatenate([np.arange(s, e) for (s, e) in starts_ends]).astype(np.int32)
    seq_of_row = np.repeat(np.arange(num_seq), lens)
    pos_in_seq = np.arange(int(lens.sum())) - np.repeat(np.cumsum(lens) - lens, lens)
    dest = (seq_of_row * p_pad + pos_in_seq).astype(np.int32)
    sid = np.full((r_total,), -1, np.int32)
    sid[dest] = (seq_of_row % seq_blk).astype(np.int32)

    src_j = jnp.asarray(src)
    dest_j = jnp.asarray(dest)
    h_states = jnp.asarray(h_states, jnp.float32)
    # Integer group labels (avoids float-equality on labels inside the kernel).
    grp_i = jnp.round(jnp.asarray(end_group, jnp.float32).reshape(-1)).astype(jnp.int32)

    x_all = jnp.zeros((r_total, din), jnp.float32).at[dest_j].set(
        jnp.take(h_states, src_j, axis=0))
    grp_pad = jnp.zeros((r_total,), jnp.int32).at[dest_j].set(
        jnp.take(grp_i, src_j, axis=0))
    sid_pad = jnp.asarray(sid)
    meta_col = jnp.stack([grp_pad, sid_pad], axis=1)                     # (R, 2)
    meta_row = jnp.stack([grp_pad.reshape(num_blk, n_rows),
                          sid_pad.reshape(num_blk, n_rows)], axis=1)     # (B, 2, N)

    # Lane-dense (128-wide) weights; zero padding is exact (the GCNs have no
    # bias, relu(0) == 0, and the padded rows of downstream weights are zero).
    w0i = _pad2(params["w0_intra"], din, LANE)
    w1i = _pad2(params["w1_intra"], LANE, LANE)
    w0e = _pad2(params["w0_inter"], LANE, LANE)
    w1e = _pad2(params["w1_inter"], LANE, LANE)
    w_out = jnp.asarray(params["w_out"], jnp.float32)
    woa = _pad2(w_out[:out_dim], LANE, LANE)        # intra half of out_embedding
    wob = _pad2(w_out[out_dim:], LANE, LANE)        # inter half of out_embedding
    bo = _pad2(jnp.reshape(params["b_out"], (1, -1)), 1, LANE)

    kernel = functools.partial(_gcn_block_kernel, n_rows, s_pad)
    out_padded = pl.pallas_call(
        kernel,
        grid=(num_blk,),
        in_specs=[
            pl.BlockSpec((n_rows, din), lambda b: (b, 0)),
            pl.BlockSpec((n_rows, 2), lambda b: (b, 0)),
            pl.BlockSpec((None, 2, n_rows), lambda b: (b, 0, 0)),
            pl.BlockSpec((din, LANE), lambda b: (0, 0)),
            pl.BlockSpec((LANE, LANE), lambda b: (0, 0)),
            pl.BlockSpec((LANE, LANE), lambda b: (0, 0)),
            pl.BlockSpec((LANE, LANE), lambda b: (0, 0)),
            pl.BlockSpec((LANE, LANE), lambda b: (0, 0)),
            pl.BlockSpec((LANE, LANE), lambda b: (0, 0)),
            pl.BlockSpec((1, LANE), lambda b: (0, 0)),
        ],
        out_specs=pl.BlockSpec((n_rows, LANE), lambda b: (b, 0)),
        out_shape=jax.ShapeDtypeStruct((r_total, LANE), jnp.float32),
        compiler_params=pltpu.CompilerParams(
            dimension_semantics=("parallel",)),
    )(x_all, meta_col, meta_row, w0i, w1i, w0e, w1e, woa, wob, bo)

    # Single gather back into the PyTorch per-sequence concatenation order.
    return jnp.take(out_padded, dest_j, axis=0)[:, :final_dim]


def _reference_forward_np(params, h_states, seq_start_end, end_group):
    """Faithful NumPy port of GCNModule.forward (incl. torch.unique GPool)."""
    h = np.asarray(h_states, np.float32)
    grp = np.asarray(end_group, np.float32).reshape(-1, 1)
    w0i = np.asarray(params["w0_intra"]); w1i = np.asarray(params["w1_intra"])
    w0e = np.asarray(params["w0_inter"]); w1e = np.asarray(params["w1_inter"])
    w_out = np.asarray(params["w_out"]); b_out = np.asarray(params["b_out"])

    def normalize(adj):
        s = adj.sum(axis=1, keepdims=True).astype(np.float32)
        return adj.astype(np.float32) / s

    outs = []
    for (start, end) in seq_start_end:
        start, end = int(start), int(end)
        p = end - start
        x = h[start:end]
        g = grp[start:end]
        a_g = np.repeat(g, p, axis=1)
        b_g = np.repeat(g.T, p, axis=0)
        m_intra = ((a_g == b_g) & (a_g != 0)) | np.eye(p, dtype=bool)
        a_intra = normalize(m_intra)

        hh = x
        for w in (w0i, w1i):
            hh = np.maximum(a_intra @ hh @ w, 0.0)
        intra = hh

        r_unique = np.unique(m_intra, axis=0)[::-1]   # unique rows (order irrelevant)
        n_group = r_unique.shape[0]
        r = normalize(r_unique)
        group_in = r @ intra
        a_inter = np.full((n_group, n_group), 1.0 / n_group, np.float32)
        hg = group_in
        for w in (w0e, w1e):
            hg = np.maximum(a_inter @ hg @ w, 0.0)
        inter = r.T @ hg

        cat = np.concatenate([intra, inter], axis=1)
        outs.append(cat @ w_out + b_out)
    return np.concatenate(outs, axis=0).astype(np.float32)


if __name__ == "__main__":
    key = jax.random.PRNGKey(0)
    k_par, k_h, k_grp, k_pos = jax.random.split(key, 4)

    INPUT_DIM, HIDDEN_DIM, OUT_DIM, FINAL_DIM = 40, 72, 16, 24
    params = init_params(k_par, input_dim=INPUT_DIM, hidden_dim=HIDDEN_DIM,
                         out_dim=OUT_DIM, final_dim=FINAL_DIM)

    # Four sequences (3, 5, 4, 5 pedestrians) -> batch of 17.  With p_pad=8 this
    # gives seq_blk=2 sequences per grid step and a 2-step grid: exercises the
    # block-diagonal mask, multi-sequence pooling and padded/phantom rows.
    seq_start_end = [(0, 3), (3, 8), (8, 12), (12, 17)]
    batch = 17
    h_states = jax.random.normal(k_h, (batch, INPUT_DIM), jnp.float32)
    # group labels at t_obs: 0 = ungrouped, 1..3 possible groups (shared labels
    # across sequences must NOT connect -- checked against the reference).
    end_group = jax.random.randint(k_grp, (batch, 1), 0, 4).astype(jnp.float32)
    end_pos = jax.random.normal(k_pos, (batch, 2), jnp.float32)  # unused by forward

    out = gcn_module_forward(params, h_states, seq_start_end, end_pos, end_group)
    out = jax.block_until_ready(out)

    ref = _reference_forward_np(params, h_states, seq_start_end, end_group)
    assert out.shape == (batch, FINAL_DIM), out.shape
    max_err = float(np.max(np.abs(np.asarray(out) - ref)))
    assert np.allclose(np.asarray(out), ref, atol=1e-3, rtol=1e-3), max_err

    print("KERNEL_OK")
</pallas_src>

<mosaic_0001>
module attributes {stable_mosaic.version = 11 : i64} {
  func.func @_gcn_block_kernel(%arg0: i32, %arg1: memref<16x40xf32, #tpu.memory_space<vmem>>, %arg2: memref<16x2xi32, #tpu.memory_space<vmem>>, %arg3: memref<1x2x16xi32, #tpu.memory_space<vmem>>, %arg4: memref<40x128xf32, #tpu.memory_space<vmem>>, %arg5: memref<128x128xf32, #tpu.memory_space<vmem>>, %arg6: memref<128x128xf32, #tpu.memory_space<vmem>>, %arg7: memref<128x128xf32, #tpu.memory_space<vmem>>, %arg8: memref<128x128xf32, #tpu.memory_space<vmem>>, %arg9: memref<128x128xf32, #tpu.memory_space<vmem>>, %arg10: memref<1x128xf32, #tpu.memory_space<vmem>>, %arg11: memref<16x128xf32, #tpu.memory_space<vmem>>) attributes {dimension_semantics = [#tpu.dimension_semantics<parallel>], iteration_bounds = array<i64: 2>, scalar_prefetch = 0 : i64, scratch_operands = 0 : i64, tpu.core_type = #tpu.core_type<tc>, window_params = [{transform_indices = @transform_0, window_bounds = array<i64: 16, 40>}, {transform_indices = @transform_1, window_bounds = array<i64: 16, 2>}, {transform_indices = @transform_2, window_bounds = array<i64: 1, 2, 16>}, {pipeline_mode = #tpu.pipeline_mode<synchronous>, transform_indices = @transform_3, window_bounds = array<i64: 40, 128>}, {pipeline_mode = #tpu.pipeline_mode<synchronous>, transform_indices = @transform_4, window_bounds = array<i64: 128, 128>}, {pipeline_mode = #tpu.pipeline_mode<synchronous>, transform_indices = @transform_5, window_bounds = array<i64: 128, 128>}, {pipeline_mode = #tpu.pipeline_mode<synchronous>, transform_indices = @transform_6, window_bounds = array<i64: 128, 128>}, {pipeline_mode = #tpu.pipeline_mode<synchronous>, transform_indices = @transform_7, window_bounds = array<i64: 128, 128>}, {pipeline_mode = #tpu.pipeline_mode<synchronous>, transform_indices = @transform_8, window_bounds = array<i64: 128, 128>}, {pipeline_mode = #tpu.pipeline_mode<synchronous>, transform_indices = @transform_9, window_bounds = array<i64: 1, 128>}, {transform_indices = @transform_10, window_bounds = array<i64: 16, 128>}]} {
    %c0 = arith.constant 0 : index
    %c0_0 = arith.constant 0 : index
    %0 = vector.load %arg2[%c0, %c0_0] : memref<16x2xi32, #tpu.memory_space<vmem>>, vector<16x2xi32>
    %c0_1 = arith.constant 0 : index
    %c0_2 = arith.constant 0 : index
    %c0_3 = arith.constant 0 : index
    %1 = vector.load %arg3[%c0_1, %c0_2, %c0_3] : memref<1x2x16xi32, #tpu.memory_space<vmem>>, vector<1x2x16xi32>
    %2 = vector.shape_cast %1 : vector<1x2x16xi32> to vector<2x16xi32>
    %3 = vector.extract_strided_slice %0 {offsets = [0, 0], sizes = [16, 1], strides = [1, 1]} : vector<16x2xi32> to vector<16x1xi32>
    %4 = vector.extract_strided_slice %0 {offsets = [0, 1], sizes = [16, 1], strides = [1, 1]} : vector<16x2xi32> to vector<16x1xi32>
    %5 = vector.extract_strided_slice %2 {offsets = [0, 0], sizes = [1, 16], strides = [1, 1]} : vector<2x16xi32> to vector<1x16xi32>
    %6 = vector.extract_strided_slice %2 {offsets = [1, 0], sizes = [1, 16], strides = [1, 1]} : vector<2x16xi32> to vector<1x16xi32>
    %7 = tpu.iota {dimensions = array<i32: 0>} : vector<16x16xi32>
    %8 = tpu.iota {dimensions = array<i32: 1>} : vector<16x16xi32>
    %9 = vector.broadcast %3 : vector<16x1xi32> to vector<16x16xi32>
    %10 = vector.broadcast %5 : vector<1x16xi32> to vector<16x16xi32>
    %11 = arith.cmpi eq, %9, %10 : vector<16x16xi32>
    %c0_i32 = arith.constant 0 : i32
    %12 = vector.broadcast %c0_i32 : i32 to vector<16x1xi32>
    %13 = arith.cmpi ne, %3, %12 : vector<16x1xi32>
    %14 = vector.broadcast %13 : vector<16x1xi1> to vector<16x16xi1>
    %15 = arith.andi %11, %14 : vector<16x16xi1>
    %16 = vector.broadcast %4 : vector<16x1xi32> to vector<16x16xi32>
    %17 = vector.broadcast %6 : vector<1x16xi32> to vector<16x16xi32>
    %18 = arith.cmpi eq, %16, %17 : vector<16x16xi32>
    %19 = arith.andi %15, %18 : vector<16x16xi1>
    %20 = arith.cmpi eq, %7, %8 : vector<16x16xi32>
    %21 = arith.ori %19, %20 : vector<16x16xi1>
    %cst = arith.constant 1.000000e+00 : f32
    %cst_4 = arith.constant 0.000000e+00 : f32
    %22 = vector.broadcast %cst : f32 to vector<16x16xf32>
    %23 = vector.broadcast %cst_4 : f32 to vector<16x16xf32>
    %24 = arith.select %21, %22, %23 : vector<16x16xi1>, vector<16x16xf32>
    %25 = arith.truncf %24 : vector<16x16xf32> to vector<16x16xbf16>
    %cst_5 = arith.constant dense<0.000000e+00> : vector<16xf32>
    %26 = vector.multi_reduction <add>, %24, %cst_5 [1] : vector<16x16xf32> to vector<16xf32>
    %27 = vector.shape_cast %26 : vector<16xf32> to vector<16x1xf32>
    %c0_i32_6 = arith.constant 0 : i32
    %28 = vector.broadcast %c0_i32_6 : i32 to vector<16x1xi32>
    %29 = arith.cmpi sge, %4, %28 : vector<16x1xi32>
    %cst_7 = arith.constant 1.000000e+00 : f32
    %30 = vector.broadcast %cst_7 : f32 to vector<16x1xf32>
    %31 = arith.divf %30, %27 : vector<16x1xf32>
    %cst_8 = arith.constant 0.000000e+00 : f32
    %32 = vector.broadcast %cst_8 : f32 to vector<16x1xf32>
    %33 = arith.select %29, %31, %32 : vector<16x1xi1>, vector<16x1xf32>
    %c0_9 = arith.constant 0 : index
    %c0_10 = arith.constant 0 : index
    %34 = vector.load %arg1[%c0_9, %c0_10] : memref<16x40xf32, #tpu.memory_space<vmem>>, vector<16x40xf32>
    %35 = arith.truncf %34 : vector<16x40xf32> to vector<16x40xbf16>
    %36 = arith.extf %35 : vector<16x40xbf16> to vector<16x40xf32>
    %37 = arith.subf %34, %36 : vector<16x40xf32>
    %38 = arith.truncf %37 : vector<16x40xf32> to vector<16x40xbf16>
    %cst_11 = arith.constant dense<0.000000e+00> : vector<16x40xf32>
    %39 = tpu.matmul %25, %35, %cst_11 {dimension_numbers = #tpu.dot_dimension_numbers<[1], [0], [0], [1], [0, 0, 1, 1], [], []>} : vector<16x16xbf16>, vector<16x40xbf16>, vector<16x40xf32> -> vector<16x40xf32>
    %cst_12 = arith.constant dense<0.000000e+00> : vector<16x40xf32>
    %40 = tpu.matmul %25, %38, %cst_12 {dimension_numbers = #tpu.dot_dimension_numbers<[1], [0], [0], [1], [0, 0, 1, 1], [], []>} : vector<16x16xbf16>, vector<16x40xbf16>, vector<16x40xf32> -> vector<16x40xf32>
    %41 = arith.addf %39, %40 : vector<16x40xf32>
    %42 = vector.broadcast %33 : vector<16x1xf32> to vector<16x40xf32>
    %43 = arith.mulf %42, %41 : vector<16x40xf32>
    %c0_13 = arith.constant 0 : index
    %c0_14 = arith.constant 0 : index
    %44 = vector.load %arg4[%c0_13, %c0_14] : memref<40x128xf32, #tpu.memory_space<vmem>>, vector<40x128xf32>
    %45 = arith.truncf %43 : vector<16x40xf32> to vector<16x40xbf16>
    %46 = arith.extf %45 : vector<16x40xbf16> to vector<16x40xf32>
    %47 = arith.subf %43, %46 : vector<16x40xf32>
    %48 = arith.truncf %47 : vector<16x40xf32> to vector<16x40xbf16>
    %49 = arith.truncf %44 : vector<40x128xf32> to vector<40x128xbf16>
    %50 = arith.extf %49 : vector<40x128xbf16> to vector<40x128xf32>
    %51 = arith.subf %44, %50 : vector<40x128xf32>
    %52 = arith.truncf %51 : vector<40x128xf32> to vector<40x128xbf16>
    %cst_15 = arith.constant dense<0.000000e+00> : vector<16x128xf32>
    %53 = tpu.matmul %45, %49, %cst_15 {dimension_numbers = #tpu.dot_dimension_numbers<[1], [0], [0], [1], [0, 0, 1, 1], [], []>} : vector<16x40xbf16>, vector<40x128xbf16>, vector<16x128xf32> -> vector<16x128xf32>
    %cst_16 = arith.constant dense<0.000000e+00> : vector<16x128xf32>
    %54 = tpu.matmul %45, %52, %cst_16 {dimension_numbers = #tpu.dot_dimension_numbers<[1], [0], [0], [1], [0, 0, 1, 1], [], []>} : vector<16x40xbf16>, vector<40x128xbf16>, vector<16x128xf32> -> vector<16x128xf32>
    %55 = arith.addf %53, %54 : vector<16x128xf32>
    %cst_17 = arith.constant dense<0.000000e+00> : vector<16x128xf32>
    %56 = tpu.matmul %48, %49, %cst_17 {dimension_numbers = #tpu.dot_dimension_numbers<[1], [0], [0], [1], [0, 0, 1, 1], [], []>} : vector<16x40xbf16>, vector<40x128xbf16>, vector<16x128xf32> -> vector<16x128xf32>
    %57 = arith.addf %55, %56 : vector<16x128xf32>
    %cst_18 = arith.constant 0.000000e+00 : f32
    %58 = vector.broadcast %cst_18 : f32 to vector<16x128xf32>
    %59 = arith.maximumf %57, %58 : vector<16x128xf32>
    %60 = arith.truncf %59 : vector<16x128xf32> to vector<16x128xbf16>
    %61 = arith.extf %60 : vector<16x128xbf16> to vector<16x128xf32>
    %62 = arith.subf %59, %61 : vector<16x128xf32>
    %63 = arith.truncf %62 : vector<16x128xf32> to vector<16x128xbf16>
    %cst_19 = arith.constant dense<0.000000e+00> : vector<16x128xf32>
    %64 = tpu.matmul %25, %60, %cst_19 {dimension_numbers = #tpu.dot_dimension_numbers<[1], [0], [0], [1], [0, 0, 1, 1], [], []>} : vector<16x16xbf16>, vector<16x128xbf16>, vector<16x128xf32> -> vector<16x128xf32>
    %cst_20 = arith.constant dense<0.000000e+00> : vector<16x128xf32>
    %65 = tpu.matmul %25, %63, %cst_20 {dimension_numbers = #tpu.dot_dimension_numbers<[1], [0], [0], [1], [0, 0, 1, 1], [], []>} : vector<16x16xbf16>, vector<16x128xbf16>, vector<16x128xf32> -> vector<16x128xf32>
    %66 = arith.addf %64, %65 : vector<16x128xf32>
    %67 = vector.broadcast %33 : vector<16x1xf32> to vector<16x128xf32>
    %68 = arith.mulf %67, %66 : vector<16x128xf32>
    %c0_21 = arith.constant 0 : index
    %c0_22 = arith.constant 0 : index
    %69 = vector.load %arg5[%c0_21, %c0_22] : memref<128x128xf32, #tpu.memory_space<vmem>>, vector<128x128xf32>
    %70 = arith.truncf %68 : vector<16x128xf32> to vector<16x128xbf16>
    %71 = arith.extf %70 : vector<16x128xbf16> to vector<16x128xf32>
    %72 = arith.subf %68, %71 : vector<16x128xf32>
    %73 = arith.truncf %72 : vector<16x128xf32> to vector<16x128xbf16>
    %74 = arith.truncf %69 : vector<128x128xf32> to vector<128x128xbf16>
    %75 = arith.extf %74 : vector<128x128xbf16> to vector<128x128xf32>
    %76 = arith.subf %69, %75 : vector<128x128xf32>
    %77 = arith.truncf %76 : vector<128x128xf32> to vector<128x128xbf16>
    %cst_23 = arith.constant dense<0.000000e+00> : vector<16x128xf32>
    %78 = tpu.matmul %70, %74, %cst_23 {dimension_numbers = #tpu.dot_dimension_numbers<[1], [0], [0], [1], [0, 0, 1, 1], [], []>} : vector<16x128xbf16>, vector<128x128xbf16>, vector<16x128xf32> -> vector<16x128xf32>
    %cst_24 = arith.constant dense<0.000000e+00> : vector<16x128xf32>
    %79 = tpu.matmul %70, %77, %cst_24 {dimension_numbers = #tpu.dot_dimension_numbers<[1], [0], [0], [1], [0, 0, 1, 1], [], []>} : vector<16x128xbf16>, vector<128x128xbf16>, vector<16x128xf32> -> vector<16x128xf32>
    %80 = arith.addf %78, %79 : vector<16x128xf32>
    %cst_25 = arith.constant dense<0.000000e+00> : vector<16x128xf32>
    %81 = tpu.matmul %73, %74, %cst_25 {dimension_numbers = #tpu.dot_dimension_numbers<[1], [0], [0], [1], [0, 0, 1, 1], [], []>} : vector<16x128xbf16>, vector<128x128xbf16>, vector<16x128xf32> -> vector<16x128xf32>
    %82 = arith.addf %80, %81 : vector<16x128xf32>
    %cst_26 = arith.constant 0.000000e+00 : f32
    %83 = vector.broadcast %cst_26 : f32 to vector<16x128xf32>
    %84 = arith.maximumf %82, %83 : vector<16x128xf32>
    %85 = tpu.iota {dimensions = array<i32: 0>} : vector<8x16xi32>
    %86 = tpu.iota {dimensions = array<i32: 1>} : vector<16x8xi32>
    %87 = vector.broadcast %6 : vector<1x16xi32> to vector<8x16xi32>
    %88 = arith.cmpi eq, %87, %85 : vector<8x16xi32>
    %cst_27 = arith.constant 1.000000e+00 : f32
    %cst_28 = arith.constant 0.000000e+00 : f32
    %89 = vector.broadcast %cst_27 : f32 to vector<8x16xf32>
    %90 = vector.broadcast %cst_28 : f32 to vector<8x16xf32>
    %91 = arith.select %88, %89, %90 : vector<8x16xi1>, vector<8x16xf32>
    %92 = arith.truncf %91 : vector<8x16xf32> to vector<8x16xbf16>
    %93 = vector.broadcast %4 : vector<16x1xi32> to vector<16x8xi32>
    %94 = arith.cmpi eq, %93, %86 : vector<16x8xi32>
    %cst_29 = arith.constant 1.000000e+00 : f32
    %cst_30 = arith.constant 0.000000e+00 : f32
    %95 = vector.broadcast %cst_29 : f32 to vector<16x8xf32>
    %96 = vector.broadcast %cst_30 : f32 to vector<16x8xf32>
    %97 = arith.select %94, %95, %96 : vector<16x8xi1>, vector<16x8xf32>
    %98 = arith.truncf %97 : vector<16x8xf32> to vector<16x8xbf16>
    %99 = tpu.iota {dimensions = array<i32: 1>} : vector<16x128xi32>
    %c127_i32 = arith.constant 127 : i32
    %100 = vector.broadcast %c127_i32 : i32 to vector<16x128xi32>
    %101 = arith.cmpi eq, %99, %100 : vector<16x128xi32>
    %cst_31 = arith.constant 1.000000e+00 : f32
    %102 = vector.broadcast %cst_31 : f32 to vector<16x128xf32>
    %103 = arith.select %101, %102, %84 : vector<16x128xi1>, vector<16x128xf32>
    %104 = vector.broadcast %33 : vector<16x1xf32> to vector<16x128xf32>
    %105 = arith.mulf %104, %103 : vector<16x128xf32>
    %106 = arith.truncf %105 : vector<16x128xf32> to vector<16x128xbf16>
    %107 = arith.extf %106 : vector<16x128xbf16> to vector<16x128xf32>
    %108 = arith.subf %105, %107 : vector<16x128xf32>
    %109 = arith.truncf %108 : vector<16x128xf32> to vector<16x128xbf16>
    %cst_32 = arith.constant dense<0.000000e+00> : vector<8x128xf32>
    %110 = tpu.matmul %92, %106, %cst_32 {dimension_numbers = #tpu.dot_dimension_numbers<[1], [0], [0], [1], [0, 0, 1, 1], [], []>} : vector<8x16xbf16>, vector<16x128xbf16>, vector<8x128xf32> -> vector<8x128xf32>
    %cst_33 = arith.constant dense<0.000000e+00> : vector<8x128xf32>
    %111 = tpu.matmul %92, %109, %cst_33 {dimension_numbers = #tpu.dot_dimension_numbers<[1], [0], [0], [1], [0, 0, 1, 1], [], []>} : vector<8x16xbf16>, vector<16x128xbf16>, vector<8x128xf32> -> vector<8x128xf32>
    %112 = arith.addf %110, %111 : vector<8x128xf32>
    %113 = vector.extract_strided_slice %112 {offsets = [0, 127], sizes = [8, 1], strides = [1, 1]} : vector<8x128xf32> to vector<8x1xf32>
    %cst_34 = arith.constant 1.000000e+00 : f32
    %114 = vector.broadcast %cst_34 : f32 to vector<8x1xf32>
    %115 = arith.maximumf %113, %114 : vector<8x1xf32>
    %cst_35 = arith.constant 1.000000e+00 : f32
    %116 = vector.broadcast %cst_35 : f32 to vector<8x1xf32>
    %117 = arith.divf %116, %115 : vector<8x1xf32>
    %118 = vector.broadcast %117 : vector<8x1xf32> to vector<8x128xf32>
    %119 = arith.mulf %112, %118 : vector<8x128xf32>
    %c0_36 = arith.constant 0 : index
    %c0_37 = arith.constant 0 : index
    %120 = vector.load %arg6[%c0_36, %c0_37] : memref<128x128xf32, #tpu.memory_space<vmem>>, vector<128x128xf32>
    %121 = arith.truncf %119 : vector<8x128xf32> to vector<8x128xbf16>
    %122 = arith.extf %121 : vector<8x128xbf16> to vector<8x128xf32>
    %123 = arith.subf %119, %122 : vector<8x128xf32>
    %124 = arith.truncf %123 : vector<8x128xf32> to vector<8x128xbf16>
    %125 = arith.truncf %120 : vector<128x128xf32> to vector<128x128xbf16>
    %126 = arith.extf %125 : vector<128x128xbf16> to vector<128x128xf32>
    %127 = arith.subf %120, %126 : vector<128x128xf32>
    %128 = arith.truncf %127 : vector<128x128xf32> to vector<128x128xbf16>
    %cst_38 = arith.constant dense<0.000000e+00> : vector<8x128xf32>
    %129 = tpu.matmul %121, %125, %cst_38 {dimension_numbers = #tpu.dot_dimension_numbers<[1], [0], [0], [1], [0, 0, 1, 1], [], []>} : vector<8x128xbf16>, vector<128x128xbf16>, vector<8x128xf32> -> vector<8x128xf32>
    %cst_39 = arith.constant dense<0.000000e+00> : vector<8x128xf32>
    %130 = tpu.matmul %121, %128, %cst_39 {dimension_numbers = #tpu.dot_dimension_numbers<[1], [0], [0], [1], [0, 0, 1, 1], [], []>} : vector<8x128xbf16>, vector<128x128xbf16>, vector<8x128xf32> -> vector<8x128xf32>
    %131 = arith.addf %129, %130 : vector<8x128xf32>
    %cst_40 = arith.constant dense<0.000000e+00> : vector<8x128xf32>
    %132 = tpu.matmul %124, %125, %cst_40 {dimension_numbers = #tpu.dot_dimension_numbers<[1], [0], [0], [1], [0, 0, 1, 1], [], []>} : vector<8x128xbf16>, vector<128x128xbf16>, vector<8x128xf32> -> vector<8x128xf32>
    %133 = arith.addf %131, %132 : vector<8x128xf32>
    %cst_41 = arith.constant 0.000000e+00 : f32
    %134 = vector.broadcast %cst_41 : f32 to vector<8x128xf32>
    %135 = arith.maximumf %133, %134 : vector<8x128xf32>
    %c0_42 = arith.constant 0 : index
    %c0_43 = arith.constant 0 : index
    %136 = vector.load %arg7[%c0_42, %c0_43] : memref<128x128xf32, #tpu.memory_space<vmem>>, vector<128x128xf32>
    %137 = arith.truncf %135 : vector<8x128xf32> to vector<8x128xbf16>
    %138 = arith.extf %137 : vector<8x128xbf16> to vector<8x128xf32>
    %139 = arith.subf %135, %138 : vector<8x128xf32>
    %140 = arith.truncf %139 : vector<8x128xf32> to vector<8x128xbf16>
    %141 = arith.truncf %136 : vector<128x128xf32> to vector<128x128xbf16>
    %142 = arith.extf %141 : vector<128x128xbf16> to vector<128x128xf32>
    %143 = arith.subf %136, %142 : vector<128x128xf32>
    %144 = arith.truncf %143 : vector<128x128xf32> to vector<128x128xbf16>
    %cst_44 = arith.constant dense<0.000000e+00> : vector<8x128xf32>
    %145 = tpu.matmul %137, %141, %cst_44 {dimension_numbers = #tpu.dot_dimension_numbers<[1], [0], [0], [1], [0, 0, 1, 1], [], []>} : vector<8x128xbf16>, vector<128x128xbf16>, vector<8x128xf32> -> vector<8x128xf32>
    %cst_45 = arith.constant dense<0.000000e+00> : vector<8x128xf32>
    %146 = tpu.matmul %137, %144, %cst_45 {dimension_numbers = #tpu.dot_dimension_numbers<[1], [0], [0], [1], [0, 0, 1, 1], [], []>} : vector<8x128xbf16>, vector<128x128xbf16>, vector<8x128xf32> -> vector<8x128xf32>
    %147 = arith.addf %145, %146 : vector<8x128xf32>
    %cst_46 = arith.constant dense<0.000000e+00> : vector<8x128xf32>
    %148 = tpu.matmul %140, %141, %cst_46 {dimension_numbers = #tpu.dot_dimension_numbers<[1], [0], [0], [1], [0, 0, 1, 1], [], []>} : vector<8x128xbf16>, vector<128x128xbf16>, vector<8x128xf32> -> vector<8x128xf32>
    %149 = arith.addf %147, %148 : vector<8x128xf32>
    %cst_47 = arith.constant 0.000000e+00 : f32
    %150 = vector.broadcast %cst_47 : f32 to vector<8x128xf32>
    %151 = arith.maximumf %149, %150 : vector<8x128xf32>
    %c0_48 = arith.constant 0 : index
    %c0_49 = arith.constant 0 : index
    %152 = vector.load %arg9[%c0_48, %c0_49] : memref<128x128xf32, #tpu.memory_space<vmem>>, vector<128x128xf32>
    %153 = arith.truncf %151 : vector<8x128xf32> to vector<8x128xbf16>
    %154 = arith.extf %153 : vector<8x128xbf16> to vector<8x128xf32>
    %155 = arith.subf %151, %154 : vector<8x128xf32>
    %156 = arith.truncf %155 : vector<8x128xf32> to vector<8x128xbf16>
    %157 = arith.truncf %152 : vector<128x128xf32> to vector<128x128xbf16>
    %158 = arith.extf %157 : vector<128x128xbf16> to vector<128x128xf32>
    %159 = arith.subf %152, %158 : vector<128x128xf32>
    %160 = arith.truncf %159 : vector<128x128xf32> to vector<128x128xbf16>
    %cst_50 = arith.constant dense<0.000000e+00> : vector<8x128xf32>
    %161 = tpu.matmul %153, %157, %cst_50 {dimension_numbers = #tpu.dot_dimension_numbers<[1], [0], [0], [1], [0, 0, 1, 1], [], []>} : vector<8x128xbf16>, vector<128x128xbf16>, vector<8x128xf32> -> vector<8x128xf32>
    %cst_51 = arith.constant dense<0.000000e+00> : vector<8x128xf32>
    %162 = tpu.matmul %153, %160, %cst_51 {dimension_numbers = #tpu.dot_dimension_numbers<[1], [0], [0], [1], [0, 0, 1, 1], [], []>} : vector<8x128xbf16>, vector<128x128xbf16>, vector<8x128xf32> -> vector<8x128xf32>
    %163 = arith.addf %161, %162 : vector<8x128xf32>
    %cst_52 = arith.constant dense<0.000000e+00> : vector<8x128xf32>
    %164 = tpu.matmul %156, %157, %cst_52 {dimension_numbers = #tpu.dot_dimension_numbers<[1], [0], [0], [1], [0, 0, 1, 1], [], []>} : vector<8x128xbf16>, vector<128x128xbf16>, vector<8x128xf32> -> vector<8x128xf32>
    %165 = arith.addf %163, %164 : vector<8x128xf32>
    %166 = arith.truncf %165 : vector<8x128xf32> to vector<8x128xbf16>
    %167 = arith.extf %166 : vector<8x128xbf16> to vector<8x128xf32>
    %168 = arith.subf %165, %167 : vector<8x128xf32>
    %169 = arith.truncf %168 : vector<8x128xf32> to vector<8x128xbf16>
    %cst_53 = arith.constant dense<0.000000e+00> : vector<16x128xf32>
    %170 = tpu.matmul %98, %166, %cst_53 {dimension_numbers = #tpu.dot_dimension_numbers<[1], [0], [0], [1], [0, 0, 1, 1], [], []>} : vector<16x8xbf16>, vector<8x128xbf16>, vector<16x128xf32> -> vector<16x128xf32>
    %cst_54 = arith.constant dense<0.000000e+00> : vector<16x128xf32>
    %171 = tpu.matmul %98, %169, %cst_54 {dimension_numbers = #tpu.dot_dimension_numbers<[1], [0], [0], [1], [0, 0, 1, 1], [], []>} : vector<16x8xbf16>, vector<8x128xbf16>, vector<16x128xf32> -> vector<16x128xf32>
    %172 = arith.addf %170, %171 : vector<16x128xf32>
    %c0_55 = arith.constant 0 : index
    %c0_56 = arith.constant 0 : index
    %173 = vector.load %arg8[%c0_55, %c0_56] : memref<128x128xf32, #tpu.memory_space<vmem>>, vector<128x128xf32>
    %174 = arith.truncf %84 : vector<16x128xf32> to vector<16x128xbf16>
    %175 = arith.extf %174 : vector<16x128xbf16> to vector<16x128xf32>
    %176 = arith.subf %84, %175 : vector<16x128xf32>
    %177 = arith.truncf %176 : vector<16x128xf32> to vector<16x128xbf16>
    %178 = arith.truncf %173 : vector<128x128xf32> to vector<128x128xbf16>
    %179 = arith.extf %178 : vector<128x128xbf16> to vector<128x128xf32>
    %180 = arith.subf %173, %179 : vector<128x128xf32>
    %181 = arith.truncf %180 : vector<128x128xf32> to vector<128x128xbf16>
    %cst_57 = arith.constant dense<0.000000e+00> : vector<16x128xf32>
    %182 = tpu.matmul %174, %178, %cst_57 {dimension_numbers = #tpu.dot_dimension_numbers<[1], [0], [0], [1], [0, 0, 1, 1], [], []>} : vector<16x128xbf16>, vector<128x128xbf16>, vector<16x128xf32> -> vector<16x128xf32>
    %cst_58 = arith.constant dense<0.000000e+00> : vector<16x128xf32>
    %183 = tpu.matmul %174, %181, %cst_58 {dimension_numbers = #tpu.dot_dimension_numbers<[1], [0], [0], [1], [0, 0, 1, 1], [], []>} : vector<16x128xbf16>, vector<128x128xbf16>, vector<16x128xf32> -> vector<16x128xf32>
    %184 = arith.addf %182, %183 : vector<16x128xf32>
    %cst_59 = arith.constant dense<0.000000e+00> : vector<16x128xf32>
    %185 = tpu.matmul %177, %178, %cst_59 {dimension_numbers = #tpu.dot_dimension_numbers<[1], [0], [0], [1], [0, 0, 1, 1], [], []>} : vector<16x128xbf16>, vector<128x128xbf16>, vector<16x128xf32> -> vector<16x128xf32>
    %186 = arith.addf %184, %185 : vector<16x128xf32>
    %187 = vector.broadcast %33 : vector<16x1xf32> to vector<16x128xf32>
    %188 = arith.mulf %187, %172 : vector<16x128xf32>
    %189 = arith.addf %186, %188 : vector<16x128xf32>
    %c0_60 = arith.constant 0 : index
    %c0_61 = arith.constant 0 : index
    %190 = vector.load %arg10[%c0_60, %c0_61] : memref<1x128xf32, #tpu.memory_space<vmem>>, vector<1x128xf32>
    %191 = vector.broadcast %190 : vector<1x128xf32> to vector<16x128xf32>
    %192 = arith.addf %189, %191 : vector<16x128xf32>
    %c0_62 = arith.constant 0 : index
    %c0_63 = arith.constant 0 : index
    %193 = vector.load %arg11[%c0_62, %c0_63] : memref<16x128xf32, #tpu.memory_space<vmem>>, vector<16x128xf32>
    tpu.vector_store %arg11[%c0_62, %c0_63], %192 {strides = array<i32>} : memref<16x128xf32, #tpu.memory_space<vmem>>, vector<16x128xf32>,
    return
  }
  func.func @transform_0(%arg0: i32) -> (i32, i32) {
    %c0_i32 = arith.constant 0 : i32
    %c0_i32_0 = arith.constant 0 : i32
    return %arg0, %c0_i32 : i32, i32
  }
  func.func @transform_1(%arg0: i32) -> (i32, i32) {
    %c0_i32 = arith.constant 0 : i32
    %c0_i32_0 = arith.constant 0 : i32
    return %arg0, %c0_i32 : i32, i32
  }
  func.func @transform_2(%arg0: i32) -> (i32, i32, i32) {
    %c0_i32 = arith.constant 0 : i32
    %c0_i32_0 = arith.constant 0 : i32
    %c0_i32_1 = arith.constant 0 : i32
    return %arg0, %c0_i32, %c0_i32_0 : i32, i32, i32
  }
  func.func @transform_3(%arg0: i32) -> (i32, i32) {
    %c0_i32 = arith.constant 0 : i32
    %c0_i32_0 = arith.constant 0 : i32
    %c0_i32_1 = arith.constant 0 : i32
    return %c0_i32, %c0_i32_0 : i32, i32
  }
  func.func @transform_4(%arg0: i32) -> (i32, i32) {
    %c0_i32 = arith.constant 0 : i32
    %c0_i32_0 = arith.constant 0 : i32
    %c0_i32_1 = arith.constant 0 : i32
    return %c0_i32, %c0_i32_0 : i32, i32
  }
  func.func @transform_5(%arg0: i32) -> (i32, i32) {
    %c0_i32 = arith.constant 0 : i32
    %c0_i32_0 = arith.constant 0 : i32
    %c0_i32_1 = arith.constant 0 : i32
    return %c0_i32, %c0_i32_0 : i32, i32
  }
  func.func @transform_6(%arg0: i32) -> (i32, i32) {
    %c0_i32 = arith.constant 0 : i32
    %c0_i32_0 = arith.constant 0 : i32
    %c0_i32_1 = arith.constant 0 : i32
    return %c0_i32, %c0_i32_0 : i32, i32
  }
  func.func @transform_7(%arg0: i32) -> (i32, i32) {
    %c0_i32 = arith.constant 0 : i32
    %c0_i32_0 = arith.constant 0 : i32
    %c0_i32_1 = arith.constant 0 : i32
    return %c0_i32, %c0_i32_0 : i32, i32
  }
  func.func @transform_8(%arg0: i32) -> (i32, i32) {
    %c0_i32 = arith.constant 0 : i32
    %c0_i32_0 = arith.constant 0 : i32
    %c0_i32_1 = arith.constant 0 : i32
    return %c0_i32, %c0_i32_0 : i32, i32
  }
  func.func @transform_9(%arg0: i32) -> (i32, i32) {
    %c0_i32 = arith.constant 0 : i32
    %c0_i32_0 = arith.constant 0 : i32
    %c0_i32_1 = arith.constant 0 : i32
    return %c0_i32, %c0_i32_0 : i32, i32
  }
  func.func @transform_10(%arg0: i32) -> (i32, i32) {
    %c0_i32 = arith.constant 0 : i32
    %c0_i32_0 = arith.constant 0 : i32
    return %arg0, %c0_i32 : i32, i32
  }
}

</mosaic_0001>

<bundles_post_ra>
// kernel: tpu_custom_call.1
= control target key start
LH: loop header
LB: loop body
LE: loop exit
PB: predicated region body
PF: predicated region fallthrough
CT: control target
= control target key end

     0   :  { %s4050_s0 = inlined_call_operand.vmem [shape: f32[32,40], index: 0, kind: input, shape index: {}]   ;;  %s4051_s1 = inlined_call_operand.vmem [shape: s32[32,2], index: 1, kind: input, shape index: {}]   ;;  %s4052_s2 = inlined_call_operand.vmem [shape: s32[2,2,16], index: 2, kind: input, shape index: {}]   ;;  %s4053_s3 = inlined_call_operand.hbm [shape: f32[40,128], index: 3, kind: input, shape index: {}]   ;;  %s4054_s4 = inlined_call_operand.hbm [shape: f32[128,128], index: 4, kind: input, shape index: {}]   ;;  %s4055_s5 = inlined_call_operand.hbm [shape: f32[128,128], index: 5, kind: input, shape index: {}]   ;;  %s4056_s6 = inlined_call_operand.hbm [shape: f32[128,128], index: 6, kind: input, shape index: {}]   ;;  %s4057_s7 = inlined_call_operand.hbm [shape: f32[128,128], index: 7, kind: input, shape index: {}]   ;;  %s4058_s8 = inlined_call_operand.hbm [shape: f32[128,128], index: 8, kind: input, shape index: {}]   ;;  %s4059_s9 = inlined_call_operand.vmem [shape: f32[1,128], index: 9, kind: input, shape index: {}]   ;;  %s4060_s10 = inlined_call_operand.hbm [shape: f32[32,128], index: 10, kind: output, shape index: {}]  }
   0x1   :  { %4063 = sst [smem:[#allocation21_spill]] %s4054_s4 }
   0x2   :  { %15 = vsyncpa [#allocation3], 0 }
   0x3   :  { %16 = vsyncpa [#allocation6], 0 }
   0x4   :  { %17 = vsyncpa [#allocation9], 0 }
   0x5   :  { %18 = vsyncpa [#allocation12], 0 }
   0x6   :  { %19 = vsyncpa [#allocation4], 0 }
   0x7   :  { %21 = vsyncpa [#allocation4 + $0x1], 0  ;;  %s3272_s13 = smov 0   ;;  %s3274_s14 = smov 0  }
   0x8   :  { %s3276_s15 = smov 0   ;;  %s3278_s16 = smov 0  }
   0x9 LB: > { %4064 = sst [smem:[#allocation19_spill]] %s3195_s15  ;;  %s3293_s17 = sadd.s32 4294967295, %s3199_s16   ;;  %s3199_s16 = sphi %s3278_s16, %s4084_s16   ;;  %s3195_s15 = sphi %s3276_s15, %s4081_s15   ;;  %s3191_s14 = sphi %s3274_s14, %s4083_s14   ;;  %s3187_s13 = sphi %s3272_s13, %s4082_s13  }
   0xa   : > { %s2265_s18 = sadd.s32 4294967294, %s3199_s16   ;;  %s3297_s19 = sadd.s32 1, %s3199_s16  }
   0xb   : > { %s259_s20 = sadd.s32 1, %s3195_s15  ;;  %s256_s21 = ssub.s32 %s3199_s16, %s3297_s19 }
   0xc   : > { %p269_p0 = scmp.ne.s32.totalorder %s3195_s15, %s3191_s14  ;;  %p257_p1 = scmp.eq.s32.totalorder %s256_s21, 0 }
   0xd   : > { %p270_p2 = scmp.eq.s32.totalorder %s3293_s17, 1  ;;  %p275_p3 = scmp.ne.s32.totalorder %s3191_s14, %s3187_s13 }
   0xe   : > { %p276_p4 = scmp.eq.s32.totalorder %s2265_s18, 1  ;;  %p2266_p7 = scmp.ge.s32.totalorder %s3199_s16, 1 }
   0xf   : > { %s3308_s22 = scalar_select %p257_p1, %s3195_s15, %s259_s20  }
  0x10   : > { %p3310_p5 = por %p270_p2, %p269_p0  ;;  %p3314_p6 = por %p276_p4, %p275_p3 }
  0x11   : > { %4065 = sst [smem:[#allocation20_spill]] %s3308_s22  ;;  %p283_p8 = scmp.lt.s32.totalorder %s3199_s16, 3 }
  0x12   : > { %p4062_p9 = scmp.eq.s32.totalorder %s3293_s17, 0  ;;  %s3201_s26 = smov [#allocation5]  }
  0x13   : > { %p3321_p10 = pnand %p2266_p7, %p283_p8  ;;  %s308_s27 = sshll.u32 %s3201_s26, 4  ;;  %s309_s27 = int_to_ptr.vmem [resolvable:$true] %s308_s27 }
  0x14   : > { %s3202_s29 = smov [#allocation8]   ;;  %s3203_s11 = smov [#allocation2]  }
  0x15   : > { %p2872_p11 = pneg %p3321_p10  ;;  %s334_s30 = sshll.u32 %s3202_s29, 4  ;;  %s335_s30 = int_to_ptr.vmem [resolvable:$true] %s334_s30 }
  0x16   : > { %s295_s12 = sshll.u32 %s3203_s11, 4  ;;  %s2978_s20 = scalar_lea.vmem %s309_s27, 2048  ;;  %s296_s12 = int_to_ptr.vmem [resolvable:$true] %s295_s12 }
  0x17   : > { %p3329_p12 = pnand %p4062_p9, %p2872_p11  ;;  %p2979_p0 = scmp.ne.s32.totalorder %s309_s27, %s2978_s20 }
  0x18   : > { %p2986_p3 = scmp.lt.s32.totalorder %s309_s27, %s309_s27  ;;  %p2987_p4 = scmp.lt.s32.totalorder %s2978_s20, %s2978_s20 }
  0x19   : > { %p3335_p13 = pneg %p3329_p12 }
  0x1a   : > { %p2988_p7 = por %p2987_p4, %p2986_p3 }
  0x1b   : > { %p2981_p1 = pnand %p2979_p0, %p3335_p13 }
  0x1d   : > { %p2982_p2 = pneg %p2981_p1 }
  0x1f   : > { %p2989_p8 = pnand %p2988_p7, %p2982_p2 }
  0x21   : > { %2992 = shalt.err (!%p2989_p8)
}
  0x22   : > { %s3204_s21 = smov 128   ;;  %s3205_s26 = smov 8  }
  0x23   : > { %s4071_s4 = sld [smem:[#allocation21_spill]]  ;;  %s3004_s22 = scalar_lea.vmem %s335_s30, 2048 }
  0x24   : > { %p3005_p11 = scmp.ne.s32.totalorder %s335_s30, %s3004_s22  ;;  %p3012_p3 = scmp.lt.s32.totalorder %s335_s30, %s335_s30 }
  0x25   : > { %p3013_p2 = scmp.lt.s32.totalorder %s3004_s22, %s3004_s22 }
  0x26   : > { %p3007_p0 = pnand %p3005_p11, %p3335_p13 }
  0x27   : > { %p3014_p4 = por %p3013_p2, %p3012_p3 }
  0x28   : > { %p3008_p1 = pneg %p3007_p0 }
  0x29   : > { %2878 = dma.hbm_to_vmem [thread:$0]  (!%p3329_p12), %s4071_s4, 2048, %s309_s27, [#allocation6], %s3204_s21, %s3204_s21, %s3205_s26  }
  0x2a   : > { %p3015_p7 = pnand %p3014_p4, %p3008_p1 }
  0x2c   : > { %3018 = shalt.err (!%p3015_p7)
}
  0x2d   : > { %2884 = dma.hbm_to_vmem [thread:$0]  (!%p3329_p12), %s4056_s6, 2048, %s335_s30, [#allocation9], %s3204_s21, %s3204_s21, %s3205_s26  }
  0x2e   : > { %s3030_s27 = scalar_lea.vmem %s296_s12, 640  ;;  %p3038_p9 = scmp.lt.s32.totalorder %s296_s12, %s296_s12 }
  0x2f   : > { %p3031_p8 = scmp.ne.s32.totalorder %s296_s12, %s3030_s27  ;;  %p3039_p3 = scmp.lt.s32.totalorder %s3030_s27, %s3030_s27 }
  0x31   : > { %p3033_p11 = pnand %p3031_p8, %p3335_p13  ;;  %p3040_p1 = por %p3039_p3, %p3038_p9 }
  0x33   : > { %p3034_p0 = pneg %p3033_p11 }
  0x35   : > { %p3041_p2 = pnand %p3040_p1, %p3034_p0 }
  0x37   : > { %3044 = shalt.err (!%p3041_p2)
}
  0x38   : > { %2875 = dma.hbm_to_vmem [thread:$0]  (!%p3329_p12), %s4053_s3, 640, %s296_s12, [#allocation3], %s3204_s21, %s3204_s21, %s3205_s26  }
  0x39   : > { %s3206_s30 = smov [#allocation7]   ;;  %s3207_s11 = smov [#allocation10]  }
  0x3a   : > { %s321_s29 = sshll.u32 %s3206_s30, 4  ;;  %s347_s20 = sshll.u32 %s3207_s11, 4  ;;  %s322_s29 = int_to_ptr.vmem [resolvable:$true] %s321_s29  ;;  %s348_s20 = int_to_ptr.vmem [resolvable:$true] %s347_s20 }
  0x3b   : > { %s3056_s4 = scalar_lea.vmem %s322_s29, 2048  ;;  %p3064_p8 = scmp.lt.s32.totalorder %s322_s29, %s322_s29 }
  0x3c   : > { %p3057_p4 = scmp.ne.s32.totalorder %s322_s29, %s3056_s4  ;;  %p3065_p11 = scmp.lt.s32.totalorder %s3056_s4, %s3056_s4 }
  0x3e   : > { %p3059_p9 = pnand %p3057_p4, %p3335_p13  ;;  %p3066_p0 = por %p3065_p11, %p3064_p8 }
  0x40   : > { %p3060_p7 = pneg %p3059_p9 }
  0x42   : > { %p3067_p3 = pnand %p3066_p0, %p3060_p7 }
  0x44   : > { %3070 = shalt.err (!%p3067_p3)
}
  0x45   : > { %2881 = dma.hbm_to_vmem [thread:$0]  (!%p3329_p12), %s4055_s5, 2048, %s322_s29, [#allocation6], %s3204_s21, %s3204_s21, %s3205_s26  }
  0x46   : > { %s3082_s22 = scalar_lea.vmem %s348_s20, 2048  ;;  %p3090_p9 = scmp.lt.s32.totalorder %s348_s20, %s348_s20 }
  0x47   : > { %p3083_p1 = scmp.ne.s32.totalorder %s348_s20, %s3082_s22  ;;  %p3091_p8 = scmp.lt.s32.totalorder %s3082_s22, %s3082_s22 }
  0x49   : > { %p3085_p2 = pnand %p3083_p1, %p3335_p13  ;;  %p3092_p7 = por %p3091_p8, %p3090_p9 }
  0x4b   : > { %p3086_p4 = pneg %p3085_p2 }
  0x4d   : > { %p3093_p11 = pnand %p3092_p7, %p3086_p4 }
  0x4f   : > { %3096 = shalt.err (!%p3093_p11)
}
  0x50   : > { %2887 = dma.hbm_to_vmem [thread:$0]  (!%p3329_p12), %s4057_s7, 2048, %s348_s20, [#allocation9], %s3204_s21, %s3204_s21, %s3205_s26  }
  0x51   : > { %s3208_s30 = smov [#allocation11]  }
  0x52   : > { %s360_s29 = sshll.u32 %s3208_s30, 4  ;;  %s361_s29 = int_to_ptr.vmem [resolvable:$true] %s360_s29 }
  0x53   : > { %s3108_s11 = scalar_lea.vmem %s361_s29, 2048  ;;  %p3116_p2 = scmp.lt.s32.totalorder %s361_s29, %s361_s29 }
  0x54   : > { %p3109_p0 = scmp.ne.s32.totalorder %s361_s29, %s3108_s11  ;;  %p3117_p4 = scmp.lt.s32.totalorder %s3108_s11, %s3108_s11 }
  0x56   : > { %p3111_p3 = pnand %p3109_p0, %p3335_p13  ;;  %p3118_p9 = por %p3117_p4, %p3116_p2 }
  0x58   : > { %p3112_p1 = pneg %p3111_p3 }
  0x5a   : > { %p3119_p8 = pnand %p3118_p9, %p3112_p1 }
  0x5c   : > { %3122 = shalt.err (!%p3119_p8)
}
  0x5d   : > { %2890 = dma.hbm_to_vmem [thread:$0]  (!%p3329_p12), %s4058_s8, 2048, %s361_s29, [#allocation12], %s3204_s21, %s3204_s21, %s3205_s26  }
  0x5e   : > { %404 = sbr.rel (%p3321_p10) target bundleno = 2559 (0x9ff), region = 60  ;;  %p4072_p13 = scmp.eq.s32.totalorder (!%p3321_p10), %s3293_s17, 0 }
  0x63   : > { %3166 = dma.done.wait (%p4072_p13), [#allocation3], 640   ;;  %p4073_p7 = pmov %p4072_p13 }
  0x65   : > { %3168 = vsyncadd (%p4073_p7), [#allocation3], 4294966656  ;;  %p4074_p11 = pmov %p4073_p7 }
  0x66   : > { %p4075_p0 = pmov %p4073_p7 }
  0x67   : > { %3170 = dma.done.wait (%p4074_p11), [#allocation6], 4096  }
  0x68   : > { %3172 = vsyncadd (%p4075_p0), [#allocation6], 4294963200  ;;  %p4076_p3 = pmov %p4075_p0 }
  0x69   : > { %p4077_p12 = pmov %p4075_p0 }
  0x6a   : > { %3174 = dma.done.wait (%p4076_p3), [#allocation9], 4096  }
  0x6b   : > { %3176 = vsyncadd (%p4077_p12), [#allocation9], 4294963200  ;;  %p4078_p10 = pmov %p4075_p0 }
  0x6c   : > { %p4079_p1 = pmov %p4075_p0 }
  0x6d   : > { %3178 = dma.done.wait (%p4078_p10), [#allocation12], 2048  }
  0x6e   : > { %3180 = vsyncadd (%p4079_p1), [#allocation12], 4294965248  ;;  %s2282_s25 = sshll.u32 %s3293_s17, 1  ;;  %v3209_v0 = vmov 0   ;;  %v3210_v1 = vmov 0.0   ;;  %v3211_v13 = vmov 1   ;;  %v492_v15 = vlaneseq }
  0x6f   : > { %2955 = vset.pattern.permute.xlu0 %v3209_v0  ;;  %p472_p2 = scmp.lt.s32.totalorder %s2282_s25, 3  ;;  %2957 = vset.pattern.permute.xlu1 %v3209_v0  ;;  %vm3212_vm2 = vmmov 0   ;;  %p483_p4 = scmp.lt.s32.totalorder %s3293_s17, 1  ;;  %vm544_vm12 = vcmask 130048   ;;  %v668_v35 = vld [vmem:[#allocation2 + $0x20] sm:$0xff]  ;;  %v666_v36 = vld [vmem:[#allocation2 + $0x10] sm:$0xff] }
  0x70   : > { %2468 = vmatprep.subr.bf16.mxu0 %v3210_v1  ;;  %2474 = vmatprep.subr.bf16.mxu1 %v3210_v1  ;;  %v3444_v16 = vshrl.u32 %v492_v15, 7  ;;  %v3451_v24 = vand.u32 127, %v492_v15  ;;  %v667_v37 = vld [vmem:[#allocation2 + $0x18] sm:$0xff]  ;;  %v677_v38 = vpack.c.bf16 %v668_v35, %v668_v35  ;;  %v664_v51 = vld [vmem:[#allocation2] sm:$0xff]  ;;  %v665_v52 = vld [vmem:[#allocation2 + $0x8] sm:$0xff]  ;;  %s468_s20 = sand.u32 1, %s3191_s14  }
  0x71   : > { %s4086_s25 = smov (!%p472_p2, %s2282_s25), 3  ;;  %2470 = vmatprep.mubr.msk.bf16.mxu0 %vm3212_vm2, %v3210_v1  ;;  %2476 = vmatprep.mubr.msk.bf16.mxu1 %vm3212_vm2, %v3210_v1  ;;  %v3481_v39 = vpack.c.bf16 %v667_v37, %v666_v36  ;;  %v675_v53 = vpack.c.bf16 %v665_v52, %v664_v51  ;;  %s2304_s27 = sshll.u32 %s3293_s17, 8 }
  0x72   : > { %s2283_s28 = sshll.u32 %s4086_s25, 3  ;;  %v505_v17 = vsub.s32 0, %v3444_v16  ;;  %v531_v21 = vsub.s32 1, %v3444_v16  ;;  %v494_v27 = vadd.s32 8, %v3444_v16  ;;  %vm537_vm8 = vcmp.eq.s32.totalorder %v3444_v16, %v3451_v24  ;;  %s2281_s25 = sshll.u32 %s468_s20, 4 }
  0x73   : > { %s481_s26 = scalar_lea.vmem %s4051_s1, %s2283_s28  ;;  %s475_s4 = scalar_lea.vmem %s4050_s0, %s2283_s28  ;;  %v682_v40 = vunpack.c.l.bf16 %v677_v38  ;;  %v680_v41 = vunpack.c.l.bf16 %v3481_v39  ;;  %v681_v42 = vunpack.c.h.bf16 %v3481_v39  ;;  %v678_v54 = vunpack.c.l.bf16 %v675_v53 }
  0x74   : > { %v3423_v2 = vld [vmem:[%s481_s26] sm:$0xff]  ;;  %v3425_v3 = vld [vmem:[%s481_s26 + $0x8] sm:$0xff]  ;;  %s484_s15 = scalar_select %p483_p4, %s3293_s17, 1  ;;  %vm538_vm13 = vcmp.eq.s32.totalorder %v494_v27, %v3451_v24  ;;  %v679_v55 = vunpack.c.h.bf16 %v675_v53 }
  0x75   : > { %498 = vperm.xlu0 %2955, %v3423_v2   ;;  %vm509_vm0 = vcmp.ne.s32.totalorder %v3423_v2, 0  ;;  %vm510_vm1 = vcmp.ne.s32.totalorder %v3425_v3, 0  ;;  %v559_v5 = vld [vmem:[%s475_s4] sm:$0xff]  ;;  %v560_v6 = vld [vmem:[%s475_s4 + $0x8] sm:$0xff]  ;;  %v687_v43 = vsub.f32 %v668_v35, %v682_v40  ;;  %v685_v44 = vsub.f32 %v666_v36, %v680_v41  ;;  %s470_s21 = scalar_lea.vmem [#allocation13], %s2281_s25  ;;  %s3214_s17 = smov [#allocation13]  }
  0x76   : > { %v511_v4 = vsel %vm509_vm0, 1, %v3209_v0  ;;  %v561_v7 = vpack.c.bf16 %v560_v6, %v559_v5  ;;  %v512_v8 = vsel %vm510_vm1, 1, %v3209_v0  ;;  %s2286_s30 = sshll.u32 %s484_s15, 1  ;;  %v686_v45 = vsub.f32 %v667_v37, %v681_v42  ;;  %v934_v27 = vld [vmem:[#allocation5 + $0x60] sm:$0xff]  ;;  %v933_v40 = vld [vmem:[#allocation5 + $0x58] sm:$0xff]  ;;  %s2119_s26 = sshll.u32 %s470_s21, 4  ;;  %s4003_s26 = int_to_ptr.vmem [resolvable:$true] %s2119_s26 }
  0x77   : > { %514 = vperm.xlu1 %2957, %v511_v4   ;;  %s486_s12 = scalar_lea.vmem %s4052_s2, %s2286_s30  ;;  %v690_v46 = vpack.c.bf16 %v687_v43, %v687_v43  ;;  %v683_v56 = vsub.f32 %v664_v51, %v678_v54  ;;  %v684_v57 = vsub.f32 %v665_v52, %v679_v55  ;;  %s4008_s15 = scalar_lea.hbm %s4060_s10, %s2304_s27 }
  0x78   : > { %v562_v9 = vunpack.c.l.bf16 %v561_v7  ;;  %v563_v10 = vunpack.c.h.bf16 %v561_v7  ;;  %2475 = vmatpush3.bf16.msra.mxu1 %v561_v7  ;;  %v491_v18 = vld [vmem:[%s486_s12] sm:$0x3]  ;;  %v689_v48 = vpack.c.bf16 %v686_v45, %v685_v44  ;;  %s4010_s30 = scalar_lea.sflag [#allocation4], %s468_s20  ;;  %s3123_s29 = scalar_lea.vmem %s4003_s26, 256 }
  0x79   : > { %501 = vperm.xlu0 %2955, %v3425_v3   ;;  %2480 = vmatprep.subr.bf16.mxu1 %v3210_v1  ;;  %v506_v20 = vrot.slane %v491_v18, %v505_v17  ;;  %v3453_v25 = vrot.slane %v491_v18, %v531_v21  ;;  %v688_v59 = vpack.c.bf16 %v684_v57, %v683_v56  ;;  %p3124_p9 = scmp.ne.s32.totalorder %s4003_s26, %s3123_s29  ;;  %s3127_s11 = sshll.u32 %s3214_s17, 4  ;;  %s3128_s11 = int_to_ptr.vmem [resolvable:$false] %s3127_s11 }
  0x7a   : > { %v564_v11 = vsub.f32 %v559_v5, %v562_v9  ;;  %v565_v12 = vsub.f32 %v560_v6, %v563_v10  ;;  %s3129_s12 = scalar_lea.vmem %s3128_s11, 512  ;;  %p3130_p7 = scmp.lt.s32.totalorder %s4003_s26, %s3128_s11 }
  0x7b   : > { %517 = vperm.xlu1 %2957, %v512_v8   ;;  %p3125_p8 = pnand %p3124_p9, %p3310_p5  ;;  %p3131_p11 = scmp.lt.s32.totalorder %s3129_s12, %s3123_s29 }
  0x7c   : > { %v566_v14 = vpack.c.bf16 %v565_v12, %v564_v11 }
  0x7d   : > { %2956 = vset.pattern.permute.xlu0 %v3211_v13  ;;  %p3126_p13 = pneg %p3125_p8  ;;  %p3132_p0 = por %p3131_p11, %p3130_p7 }
  0x7e   : > { %524 = vperm.xlu0 %2956, %v3423_v2   ;;  %2469 = vmatpush3.bf16.msra.mxu0 %v566_v14 }
  0x7f   : > { %2958 = vset.pattern.permute.xlu1 %v3211_v13  ;;  %2500 = vmatprep.subr.bf16.mxu0 %v3210_v1  ;;  %p3133_p3 = pnand %p3132_p0, %p3126_p13 }
  0x80   : > { %527 = vperm.xlu1 %2958, %v3425_v3  }
  0xf0   : > { %v499_v19 = vpop.permute.xlu0 %498 }
  0xf1   : > { %vm507_vm3 = vcmp.eq.s32.totalorder %v499_v19, %v506_v20 }
  0xf2   : > { %v515_v22 = vpop.permute.xlu1 %514 }
  0xf3   : > { %vm519_vm4 = vcmp.eq.s32.totalorder %v515_v22, 1  ;;  %v936_v22 = vld [vmem:[#allocation5 + $0x70] sm:$0xff] }
  0xf4   : > { %v502_v23 = vpop.permute.xlu0 %501  ;;  %vm521_vm6 = vmand %vm507_vm3, %vm519_vm4  ;;  %vm695_vm3 = vcmask 1043456   ;;  %vm551_vm4 = vcmp.ge.s32.totalorder %v3423_v2, 0 }
  0xf5   : > { %vm508_vm7 = vcmp.eq.s32.totalorder %v502_v23, %v506_v20  ;;  %v697_v47 = vsel %vm695_vm3, %v690_v46, 0  ;;  %v741_v58 = vsel %vm695_vm3, %v677_v38, 0  ;;  %v937_v23 = vld [vmem:[#allocation5 + $0x78] sm:$0xff] }
  0xf6   : > { %v518_v26 = vpop.permute.xlu1 %517 }
  0xf7   : > { %vm520_vm5 = vcmp.eq.s32.totalorder %v518_v26, 1  ;;  %v3515_v26 = vpack.c.bf16 %v937_v23, %v936_v22 }
  0xf8   : > { %vm522_vm9 = vmand %vm508_vm7, %vm520_vm5  ;;  %vm552_vm5 = vcmp.ge.s32.totalorder %v3425_v3, 0  ;;  %vm1127_vm7 = vcmp.eq.s32.totalorder %v3451_v24, 127 }
  0xf9   : > { %v3456_v28 = vpop.permute.xlu0 %524 }
  0xfa   : > { %vm533_vm10 = vcmp.eq.s32.totalorder %v3456_v28, %v3453_v25 }
  0xfb   : > { %vm535_vm11 = vmand %vm521_vm6, %vm533_vm10  ;;  %v3462_v29 = vpop.permute.xlu1 %527  ;;  %vm691_vm6 = vcmask 326656  }
  0xfc   : > { %vm534_vm14 = vcmp.eq.s32.totalorder %v3462_v29, %v3453_v25  ;;  %vm539_vm15 = vmor %vm535_vm11, %vm537_vm8  ;;  %vm1119_vm8 = vcmp.eq.s32.totalorder %v3453_v25, %v3444_v16  ;;  %v3213_v16 = vmov 127   ;;  %v1244_v25 = vld [vmem:[#allocation7 + $0x70] sm:$0xff]  ;;  %vm1123_vm10 = vcmp.eq.s32.totalorder %v3462_v29, %v3451_v24 }
  0xfd   : > { %vm536_vm0 = vmand %vm522_vm9, %vm534_vm14  ;;  %v541_v30 = vsel %vm539_vm15, 1.0, %v3210_v1  ;;  %vm1122_vm9 = vcmp.eq.s32.totalorder %v3456_v28, %v3451_v24  ;;  %vm1803_vm11 = vcmask 64512  }
  0xfe   : > { %v545_v31 = vsel %vm544_vm12, %v541_v30, 0.0  ;;  %vm540_vm1 = vmor %vm536_vm0, %vm538_vm13 }
  0xff   : > { %546 = vadd.xlane.f32.xlu1 %v545_v31  ;;  %v542_v32 = vsel %vm540_vm1, 1.0, %v3210_v1 }
 0x100   : > { %v548_v33 = vsel %vm544_vm12, %v542_v32, 0.0  ;;  %v3471_v34 = vpack.c.bf16 %v542_v32, %v541_v30  ;;  %v935_v30 = vld [vmem:[#allocation5 + $0x68] sm:$0xff]  ;;  %v966_v32 = vunpack.c.l.bf16 %v3515_v26 }
 0x101   : > { %549 = vadd.xlane.f32.xlu0 %v548_v33  ;;  %v3517_v31 = vpack.c.bf16 %v935_v30, %v934_v27  ;;  %v967_v33 = vunpack.c.h.bf16 %v3515_v26 }
 0x102   : > { %2471 = vmatmul.mubr.msk.bf16.vlgmr.msra.gmra.mxu0 %vm544_vm12, %v3471_v34  ;;  %2477 = vmatmul.mubr.msk.bf16.vlgmr.msra.gmra.mxu1 %vm544_vm12, %v3471_v34  ;;  %v982_v37 = vsub.f32 %v936_v22, %v966_v32 }
 0x103   : > { %2486 = vmatprep.mubr.msk.bf16.mxu1 %vm3212_vm2, %v3210_v1  ;;  %2506 = vmatprep.mubr.msk.bf16.mxu0 %vm3212_vm2, %v3210_v1  ;;  %v964_v35 = vunpack.c.l.bf16 %v3517_v31  ;;  %v965_v36 = vunpack.c.h.bf16 %v3517_v31  ;;  %v983_v38 = vsub.f32 %v937_v23, %v967_v33  ;;  %v929_v23 = vld [vmem:[#allocation5 + $0x38] sm:$0xff]  ;;  %v926_v33 = vld [vmem:[#allocation5 + $0x20] sm:$0xff] }
 0x104   : > { %2481 = vmatpush3.bf16.msra.mxu1 %v697_v47  ;;  %2501 = vmatpush3.bf16.msra.mxu0 %v741_v58 }
 0x105   : > { %2482 = vmatprep.subr.bf16.mxu1 %v3210_v1  ;;  %2502 = vmatprep.subr.bf16.mxu0 %v3210_v1  ;;  %v980_v41 = vsub.f32 %v934_v27, %v964_v35  ;;  %v981_v42 = vsub.f32 %v935_v30, %v965_v36  ;;  %v991_v44 = vpack.c.bf16 %v983_v38, %v982_v37  ;;  %v927_v35 = vld [vmem:[#allocation5 + $0x28] sm:$0xff] }
 0x106   : > { %v3559_v38 = vpack.c.bf16 %v927_v35, %v926_v33 }
 0x107   : > { %v990_v47 = vpack.c.bf16 %v981_v42, %v980_v41  ;;  %v924_v42 = vld [vmem:[#allocation5 + $0x10] sm:$0xff] }
 0x108   : > { %2483 = vmatpush3.bf16.msra.mxu1 %v689_v48  ;;  %2503 = vmatpush3.bf16.msra.mxu0 %v3481_v39  ;;  %v930_v48 = vld [vmem:[#allocation5 + $0x40] sm:$0xff]  ;;  %v957_v41 = vunpack.c.h.bf16 %v3559_v38 }
 0x109   : > { %2484 = vmatprep.subr.bf16.mxu1 %v3210_v1  ;;  %2504 = vmatprep.subr.bf16.mxu0 %v3210_v1 }
 0x10c   : > { %2485 = vmatpush3.bf16.msra.mxu1 %v688_v59  ;;  %2505 = vmatpush3.bf16.msra.mxu0 %v675_v53 }
 0x10d   : > { %2490 = vmatprep.subr.bf16.mxu1 %v3210_v1  ;;  %2522 = vmatprep.subr.bf16.mxu0 %v3210_v1 }
 0x188   : > { %v547_v49 = vpop.xlane.xlu1 %546 }
 0x189   : > { %2961 = vrcp.f32 %v547_v49  ;;  %v931_v49 = vld [vmem:[#allocation5 + $0x48] sm:$0xff] }
 0x18a   : > { %v550_v50 = vpop.xlane.xlu0 %549  ;;  %v3528_v52 = vpack.c.bf16 %v931_v49, %v930_v48 }
 0x18b   : > { %2963 = vrcp.f32 %v550_v50 }
 0x18c   : > { %v961_v54 = vunpack.c.h.bf16 %v3528_v52 }
 0x18e   : > { %v977_v57 = vsub.f32 %v931_v49, %v961_v54 }
 0x196   : > { %v2962_v60 = vpop.eup %2961 }
 0x197   : > { %v557_v61 = vsel %vm551_vm4, %v2962_v60, 0.0 }
 0x198   : > { %v2964_v62 = vpop.eup %2963  ;;  %654 = vperm.xlu0 %2956, %v557_v61  }
 0x199   : > { %v558_v63 = vsel %vm552_vm5, %v2964_v62, 0.0 }
 0x19a   : > { %659 = vperm.xlu1 %2958, %v558_v63  }
 0x19c   : > { %2960 = vset.pattern.permute.xlu0 %v3213_v16 }
 0x19e   : > { %2959 = vset.pattern.permute.xlu1 %v3213_v16 }
 0x1c2   : > { %v604_v0 = vpop.f32.mrf.mxu0  ;;  %v645_v2 = vpop.f32.mrf.mxu1 }
 0x1c3   : > { %v646_v3 = vadd.f32 %v645_v2, %v604_v0 }
 0x1c4   : > { %v2472_v4 = vpop.f32.mrf.mxu0  ;;  %v2478_v5 = vpop.f32.mrf.mxu1 }
 0x1c6   : > { %v607_v6 = vpop.f32.mrf.mxu0  ;;  %v648_v7 = vpop.f32.mrf.mxu1 }
 0x1c7   : > { %v649_v8 = vadd.f32 %v648_v7, %v607_v6 }
 0x1c8   : > { %v2473_v9 = vpop.f32.mrf.mxu0  ;;  %v2479_v10 = vpop.f32.mrf.mxu1 }
 0x213   : > { %v3496_v11 = vpop.permute.xlu0 %654 }
 0x214   : > { %v662_v13 = vmul.f32 %v3496_v11, %v646_v3 }
 0x215   : > { %v3498_v12 = vpop.permute.xlu1 %659 }
 0x216   : > { %v663_v14 = vmul.f32 %v3498_v12, %v649_v8 }
 0x218   : > { %v669_v15 = vpack.c.bf16 %v663_v14, %v662_v13 }
 0x21a   : > { %v670_v17 = vunpack.c.l.bf16 %v669_v15  ;;  %v671_v18 = vunpack.c.h.bf16 %v669_v15  ;;  %2487 = vmatmul.mubr.msk.bf16.vlgmr.msra.gmra.mxu1 %vm691_vm6, %v669_v15 }
 0x21b   : > { %2491 = vmatpush3.bf16.msra.mxu1 %v741_v58  ;;  %2496 = vmatprep.mubr.msk.bf16.mxu1 %vm3212_vm2, %v3210_v1 }
 0x21c   : > { %v672_v19 = vsub.f32 %v662_v13, %v670_v17  ;;  %v673_v20 = vsub.f32 %v663_v14, %v671_v18  ;;  %2492 = vmatprep.subr.bf16.mxu1 %v3210_v1 }
 0x21e   : > { %v674_v21 = vpack.c.bf16 %v673_v20, %v672_v19 }
 0x21f   : > { %2493 = vmatpush3.bf16.msra.mxu1 %v3481_v39  ;;  %v932_v39 = vld [vmem:[#allocation5 + $0x50] sm:$0xff] }
 0x220   : > { %2507 = vmatmul.mubr.msk.bf16.vlgmr.msra.gmra.mxu0 %vm691_vm6, %v674_v21  ;;  %2494 = vmatprep.subr.bf16.mxu1 %v3210_v1  ;;  %v3523_v43 = vpack.c.bf16 %v933_v40, %v932_v39 }
 0x221   : > { %2538 = vmatprep.mubr.msk.bf16.mxu0 %vm3212_vm2, %v3210_v1  ;;  %2523 = vmatpush3.bf16.msra.mxu0 %v991_v44  ;;  %v925_v44 = vld [vmem:[#allocation5 + $0x18] sm:$0xff] }
 0x222   : > { %v962_v45 = vunpack.c.l.bf16 %v3523_v43  ;;  %v963_v46 = vunpack.c.h.bf16 %v3523_v43  ;;  %2524 = vmatprep.subr.bf16.mxu0 %v3210_v1 }
 0x223   : > { %2495 = vmatpush3.bf16.msra.mxu1 %v675_v53  ;;  %v960_v53 = vunpack.c.l.bf16 %v3528_v52 }
 0x224   : > { %2510 = vmatprep.subr.bf16.mxu1 %v3210_v1  ;;  %v978_v50 = vsub.f32 %v932_v39, %v962_v45  ;;  %v979_v51 = vsub.f32 %v933_v40, %v963_v46  ;;  %v956_v40 = vunpack.c.l.bf16 %v3559_v38  ;;  %v973_v46 = vsub.f32 %v927_v35, %v957_v41 }
 0x225   : > { %2525 = vmatpush3.bf16.msra.mxu0 %v990_v47  ;;  %v976_v56 = vsub.f32 %v930_v48, %v960_v53  ;;  %v945_v47 = vpack.c.bf16 %v925_v44, %v924_v42  ;;  %v923_v53 = vld [vmem:[#allocation5 + $0x8] sm:$0xff] }
 0x226   : > { %2497 = vmatmul.mubr.msk.bf16.vlgmr.msra.gmra.mxu1 %vm691_vm6, %v669_v15  ;;  %v989_v55 = vpack.c.bf16 %v979_v51, %v978_v50  ;;  %2526 = vmatprep.subr.bf16.mxu0 %v3210_v1  ;;  %v972_v45 = vsub.f32 %v926_v33, %v956_v40  ;;  %v922_v51 = vld [vmem:[#allocation5] sm:$0xff] }
 0x227   : > { %2512 = vmatprep.mubr.msk.bf16.mxu1 %vm3212_vm2, %v3210_v1  ;;  %v988_v58 = vpack.c.bf16 %v977_v57, %v976_v56  ;;  %v954_v49 = vunpack.c.l.bf16 %v945_v47  ;;  %v955_v50 = vunpack.c.h.bf16 %v945_v47  ;;  %v944_v56 = vpack.c.bf16 %v923_v53, %v922_v51 }
 0x228   : > { %v986_v48 = vpack.c.bf16 %v973_v46, %v972_v45 }
 0x229   : > { %2527 = vmatpush3.bf16.msra.mxu0 %v989_v55  ;;  %v970_v54 = vsub.f32 %v924_v42, %v954_v49  ;;  %v971_v55 = vsub.f32 %v925_v44, %v955_v50 }
 0x22a   : > { %2528 = vmatprep.subr.bf16.mxu0 %v3210_v1 }
 0x22b   : > { %v985_v57 = vpack.c.bf16 %v971_v55, %v970_v54 }
 0x22d   : > { %2529 = vmatpush3.bf16.msra.mxu0 %v988_v58  ;;  %v952_v58 = vunpack.c.l.bf16 %v944_v56 }
 0x22e   : > { %2530 = vmatprep.subr.bf16.mxu0 %v3210_v1 }
 0x2da   : > { %v733_v59 = vpop.f32.mrf.mxu1 }
 0x2dc   : > { %v2488_v60 = vpop.f32.mrf.mxu1 }
 0x2dd   : > { %v968_v60 = vsub.f32 %v922_v51, %v952_v58 }
 0x2de   : > { %v736_v61 = vpop.f32.mrf.mxu1 }
 0x2e0   : > { %v2489_v62 = vpop.f32.mrf.mxu1  ;;  %v821_v63 = vpop.f32.mrf.mxu0 }
 0x2e2   : > { %v2508_v0 = vpop.f32.mrf.mxu0 }
 0x2e4   : > { %v824_v2 = vpop.f32.mrf.mxu0 }
 0x2e6   : > { %v777_v3 = vpop.f32.mrf.mxu1  ;;  %v2509_v4 = vpop.f32.mrf.mxu0 }
 0x2e7   : > { %v778_v5 = vadd.f32 %v777_v3, %v733_v59  ;;  %v953_v59 = vunpack.c.h.bf16 %v944_v56 }
 0x2e8   : > { %v2498_v6 = vpop.f32.mrf.mxu1 }
 0x2e9   : > { %v828_v8 = vadd.f32 %v821_v63, %v778_v5 }
 0x2ea   : > { %v780_v7 = vpop.f32.mrf.mxu1 }
 0x2eb   : > { %v781_v9 = vadd.f32 %v780_v7, %v736_v61  ;;  %v830_v14 = vmax.f32 %v828_v8, 0.0  ;;  %v969_v61 = vsub.f32 %v923_v53, %v953_v59 }
 0x2ec   : > { %v2499_v10 = vpop.f32.mrf.mxu1 }
 0x2ed   : > { %v829_v13 = vadd.f32 %v824_v2, %v781_v9  ;;  %v984_v62 = vpack.c.bf16 %v969_v61, %v968_v60  ;;  %v1245_v61 = vld [vmem:[#allocation7 + $0x78] sm:$0xff] }
 0x2ef   : > { %v831_v15 = vmax.f32 %v829_v13, 0.0 }
 0x2f1   : > { %v832_v17 = vpack.c.bf16 %v831_v15, %v830_v14 }
 0x2f3   : > { %v833_v18 = vunpack.c.l.bf16 %v832_v17  ;;  %v834_v19 = vunpack.c.h.bf16 %v832_v17 }
 0x2f5   : > { %v835_v20 = vsub.f32 %v830_v14, %v833_v18  ;;  %v836_v21 = vsub.f32 %v831_v15, %v834_v19 }
 0x2f7   : > { %v837_v22 = vpack.c.bf16 %v836_v21, %v835_v20 }
 0x2f9   : > { %2511 = vmatpush3.bf16.msra.mxu1 %v837_v22 }
 0x2fa   : > { %2516 = vmatprep.subr.bf16.mxu1 %v3210_v1 }
 0x2fc   : > { %2513 = vmatmul.mubr.msk.bf16.vlgmr.msra.gmra.mxu1 %vm544_vm12, %v3471_v34 }
 0x2fd   : > { %2517 = vmatpush3.bf16.msra.mxu1 %v832_v17  ;;  %2518 = vmatprep.mubr.msk.bf16.mxu1 %vm3212_vm2, %v3210_v1 }
 0x2fe   : > { %2542 = vmatprep.subr.bf16.mxu1 %v3210_v1 }
 0x304   : > { %2519 = vmatmul.mubr.msk.bf16.vlgmr.msra.gmra.mxu1 %vm544_vm12, %v3471_v34  ;;  %v928_v34 = vld [vmem:[#allocation5 + $0x30] sm:$0xff] }
 0x305   : > { %2543 = vmatpush3.bf16.msra.mxu1 %v3515_v26  ;;  %2558 = vmatprep.mubr.msk.bf16.mxu1 %vm3212_vm2, %v3210_v1  ;;  %v3553_v27 = vpack.c.bf16 %v929_v23, %v928_v34 }
 0x306   : > { %2544 = vmatprep.subr.bf16.mxu1 %v3210_v1 }
 0x307   : > { %v958_v30 = vunpack.c.l.bf16 %v3553_v27  ;;  %v959_v32 = vunpack.c.h.bf16 %v3553_v27 }
 0x309   : > { %2545 = vmatpush3.bf16.msra.mxu1 %v3517_v31  ;;  %v974_v36 = vsub.f32 %v928_v34, %v958_v30  ;;  %v975_v37 = vsub.f32 %v929_v23, %v959_v32 }
 0x30a   : > { %2546 = vmatprep.subr.bf16.mxu1 %v3210_v1 }
 0x30b   : > { %v987_v39 = vpack.c.bf16 %v975_v37, %v974_v36 }
 0x30d   : > { %2547 = vmatpush3.bf16.msra.mxu1 %v3523_v43  ;;  %2531 = vmatpush3.bf16.msra.mxu0 %v987_v39 }
 0x30e   : > { %2548 = vmatprep.subr.bf16.mxu1 %v3210_v1  ;;  %2532 = vmatprep.subr.bf16.mxu0 %v3210_v1 }
 0x311   : > { %2549 = vmatpush3.bf16.msra.mxu1 %v3528_v52  ;;  %2533 = vmatpush3.bf16.msra.mxu0 %v986_v48 }
 0x312   : > { %2550 = vmatprep.subr.bf16.mxu1 %v3210_v1  ;;  %2534 = vmatprep.subr.bf16.mxu0 %v3210_v1 }
 0x315   : > { %2551 = vmatpush3.bf16.msra.mxu1 %v3553_v27  ;;  %2535 = vmatpush3.bf16.msra.mxu0 %v985_v57 }
 0x316   : > { %2552 = vmatprep.subr.bf16.mxu1 %v3210_v1  ;;  %2536 = vmatprep.subr.bf16.mxu0 %v3210_v1 }
 0x319   : > { %2553 = vmatpush3.bf16.msra.mxu1 %v3559_v38  ;;  %2537 = vmatpush3.bf16.msra.mxu0 %v984_v62  ;;  %v1242_v62 = vld [vmem:[#allocation7 + $0x60] sm:$0xff] }
 0x31a   : > { %2554 = vmatprep.subr.bf16.mxu1 %v3210_v1  ;;  %2562 = vmatprep.subr.bf16.mxu0 %v3210_v1 }
 0x31d   : > { %2555 = vmatpush3.bf16.msra.mxu1 %v945_v47 }
 0x31e   : > { %2556 = vmatprep.subr.bf16.mxu1 %v3210_v1 }
 0x321   : > { %2557 = vmatpush3.bf16.msra.mxu1 %v944_v56 }
 0x322   : > { %2582 = vmatprep.subr.bf16.mxu1 %v3210_v1 }
 0x3bc   : > { %v872_v63 = vpop.f32.mrf.mxu1 }
 0x3be   : > { %v2514_v0 = vpop.f32.mrf.mxu1 }
 0x3bf   : > { %v1243_v0 = vld [vmem:[#allocation7 + $0x68] sm:$0xff] }
 0x3c0   : > { %v875_v2 = vpop.f32.mrf.mxu1 }
 0x3c2   : > { %v2515_v3 = vpop.f32.mrf.mxu1 }
 0x3c3   : > { %v1241_v3 = vld [vmem:[#allocation7 + $0x58] sm:$0xff] }
 0x3c4   : > { %v913_v4 = vpop.f32.mrf.mxu1 }
 0x3c5   : > { %v914_v6 = vadd.f32 %v913_v4, %v872_v63  ;;  %v3617_v63 = vpack.c.bf16 %v1245_v61, %v1244_v25  ;;  %v3619_v4 = vpack.c.bf16 %v1243_v0, %v1242_v62 }
 0x3c6   : > { %v2520_v5 = vpop.f32.mrf.mxu1 }
 0x3c7   : > { %v920_v10 = vmul.f32 %v914_v6, %v3496_v11  ;;  %v1238_v6 = vld [vmem:[#allocation7 + $0x40] sm:$0xff] }
 0x3c8   : > { %v916_v7 = vpop.f32.mrf.mxu1 }
 0x3c9   : > { %v917_v8 = vadd.f32 %v916_v7, %v875_v2  ;;  %v1240_v2 = vld [vmem:[#allocation7 + $0x50] sm:$0xff]  ;;  %v1239_v7 = vld [vmem:[#allocation7 + $0x48] sm:$0xff] }
 0x3ca   : > { %v2521_v9 = vpop.f32.mrf.mxu1  ;;  %v3621_v5 = vpack.c.bf16 %v1241_v3, %v1240_v2 }
 0x3cb   : > { %v921_v13 = vmul.f32 %v917_v8, %v3498_v12  ;;  %v1272_v8 = vunpack.c.l.bf16 %v3617_v63  ;;  %v1273_v9 = vunpack.c.h.bf16 %v3617_v63 }
 0x3cd   : > { %v938_v14 = vpack.c.bf16 %v921_v13, %v920_v10 }
 0x3cf   : > { %2539 = vmatmul.mubr.bf16.vlgmr.msra.gmra.mxu0 %v938_v14  ;;  %2559 = vmatmul.mubr.bf16.vlgmr.msra.gmra.mxu1 %v938_v14  ;;  %v940_v15 = vunpack.c.h.bf16 %v938_v14 }
 0x3d0   : > { %2563 = vmatpush3.bf16.msra.mxu0 %v3515_v26  ;;  %2578 = vmatprep.mubr.msk.bf16.mxu0 %vm3212_vm2, %v3210_v1  ;;  %v939_v26 = vunpack.c.l.bf16 %v938_v14  ;;  %v3629_v14 = vpack.c.bf16 %v1239_v7, %v1238_v6 }
 0x3d1   : > { %2564 = vmatprep.subr.bf16.mxu0 %v3210_v1  ;;  %2584 = vmatprep.mubr.msk.bf16.mxu1 %vm3212_vm2, %v3210_v1  ;;  %v942_v17 = vsub.f32 %v921_v13, %v940_v15  ;;  %v1271_v13 = vunpack.c.h.bf16 %v3619_v4  ;;  %v1289_v15 = vsub.f32 %v1245_v61, %v1273_v9 }
 0x3d4   : > { %2565 = vmatpush3.bf16.msra.mxu0 %v3517_v31  ;;  %v941_v31 = vsub.f32 %v920_v10, %v939_v26  ;;  %v1270_v10 = vunpack.c.l.bf16 %v3619_v4  ;;  %v1288_v26 = vsub.f32 %v1244_v25, %v1272_v8 }
 0x3d5   : > { %2566 = vmatprep.subr.bf16.mxu0 %v3210_v1 }
 0x3d8   : > { %2567 = vmatpush3.bf16.msra.mxu0 %v3523_v43  ;;  %v943_v43 = vpack.c.bf16 %v942_v17, %v941_v31  ;;  %v1268_v31 = vunpack.c.l.bf16 %v3621_v5  ;;  %v1269_v17 = vunpack.c.h.bf16 %v3621_v5 }
 0x3d9   : > { %2568 = vmatprep.subr.bf16.mxu0 %v3210_v1 }
 0x3dc   : > { %2569 = vmatpush3.bf16.msra.mxu0 %v3528_v52 }
 0x3dd   : > { %2570 = vmatprep.subr.bf16.mxu0 %v3210_v1 }
 0x3e0   : > { %2571 = vmatpush3.bf16.msra.mxu0 %v3553_v27 }
 0x3e1   : > { %2572 = vmatprep.subr.bf16.mxu0 %v3210_v1 }
 0x3e4   : > { %2573 = vmatpush3.bf16.msra.mxu0 %v3559_v38 }
 0x3e5   : > { %2574 = vmatprep.subr.bf16.mxu0 %v3210_v1 }
 0x3e8   : > { %2575 = vmatpush3.bf16.msra.mxu0 %v945_v47 }
 0x3e9   : > { %2576 = vmatprep.subr.bf16.mxu0 %v3210_v1 }
 0x3ec   : > { %2577 = vmatpush3.bf16.msra.mxu0 %v944_v56  ;;  %v1120_v56 = vsel %vm1119_vm8, 1.0, %v3210_v1 }
 0x3ed   : > { %2614 = vmatprep.subr.bf16.mxu0 %v3210_v1  ;;  %v1121_v60 = vpack.c.bf16 %v1120_v56, %v1120_v56 }
 0x3ef   : > { %2579 = vmatmul.mubr.bf16.vlgmr.msra.gmra.mxu0 %v943_v43  ;;  %v1286_v43 = vsub.f32 %v1242_v62, %v1270_v10 }
 0x3f0   : > { %2630 = vmatprep.mubr.msk.bf16.mxu0 %vm3212_vm2, %v3210_v1  ;;  %2615 = vmatpush3.bf16.msra.mxu0 %v3617_v63 }
 0x3f1   : > { %2616 = vmatprep.subr.bf16.mxu0 %v3210_v1 }
 0x3f4   : > { %2617 = vmatpush3.bf16.msra.mxu0 %v3619_v4 }
 0x3f5   : > { %2618 = vmatprep.subr.bf16.mxu0 %v3210_v1 }
 0x3f8   : > { %2619 = vmatpush3.bf16.msra.mxu0 %v3621_v5 }
 0x3f9   : > { %2620 = vmatprep.subr.bf16.mxu0 %v3210_v1 }
 0x3fc   : > { %2621 = vmatpush3.bf16.msra.mxu0 %v3629_v14 }
 0x3fd   : > { %2622 = vmatprep.subr.bf16.mxu0 %v3210_v1 }
 0x48f   : > { %v1026_v52 = vpop.f32.mrf.mxu0  ;;  %v1067_v18 = vpop.f32.mrf.mxu1 }
 0x490   : > { %v1068_v27 = vadd.f32 %v1067_v18, %v1026_v52  ;;  %v1287_v52 = vsub.f32 %v1243_v0, %v1271_v13  ;;  %v1236_v18 = vld [vmem:[#allocation7 + $0x30] sm:$0xff] }
 0x491   : > { %v2540_v19 = vpop.f32.mrf.mxu0  ;;  %v2560_v20 = vpop.f32.mrf.mxu1 }
 0x492   : > { %v1237_v19 = vld [vmem:[#allocation7 + $0x38] sm:$0xff]  ;;  %v1297_v20 = vpack.c.bf16 %v1289_v15, %v1288_v26  ;;  %v1230_v26 = vld [vmem:[#allocation7] sm:$0xff]  ;;  %v1231_v15 = vld [vmem:[#allocation7 + $0x8] sm:$0xff] }
 0x493   : > { %v1029_v21 = vpop.f32.mrf.mxu0  ;;  %v1070_v22 = vpop.f32.mrf.mxu1 }
 0x494   : > { %v1071_v35 = vadd.f32 %v1070_v22, %v1029_v21  ;;  %v1266_v21 = vunpack.c.l.bf16 %v3629_v14  ;;  %v1267_v22 = vunpack.c.h.bf16 %v3629_v14 }
 0x495   : > { %v2541_v34 = vpop.f32.mrf.mxu0  ;;  %v2561_v23 = vpop.f32.mrf.mxu1 }
 0x496   : > { %v1296_v34 = vpack.c.bf16 %v1287_v52, %v1286_v43  ;;  %v1284_v23 = vsub.f32 %v1240_v2, %v1268_v31  ;;  %v1250_v31 = vpack.c.bf16 %v1231_v15, %v1230_v26 }
 0x498   : > { %v1259_v43 = vunpack.c.h.bf16 %v1250_v31 }
 0x4af   : > { %v1108_v30 = vpop.f32.mrf.mxu0 }
 0x4b0   : > { %v1115_v32 = vadd.f32 %v1108_v30, %v1068_v27  ;;  %v1285_v27 = vsub.f32 %v1241_v3, %v1269_v17  ;;  %v3637_v30 = vpack.c.bf16 %v1237_v19, %v1236_v18  ;;  %v1258_v17 = vunpack.c.l.bf16 %v1250_v31 }
 0x4b1   : > { %v2580_v33 = vpop.f32.mrf.mxu0 }
 0x4b2   : > { %v1117_v36 = vmax.f32 %v1115_v32, 0.0  ;;  %v1234_v32 = vld [vmem:[#allocation7 + $0x20] sm:$0xff]  ;;  %v1235_v33 = vld [vmem:[#allocation7 + $0x28] sm:$0xff]  ;;  %2623 = vmatpush3.bf16.msra.mxu0 %v3637_v30  ;;  %v1274_v52 = vsub.f32 %v1230_v26, %v1258_v17  ;;  %v1423_v26 = vld [vmem:[#allocation8 + $0x18] sm:$0xff] }
 0x4b3   : > { %v1111_v37 = vpop.f32.mrf.mxu0  ;;  %2624 = vmatprep.subr.bf16.mxu0 %v3210_v1 }
 0x4b4   : > { %v1116_v38 = vadd.f32 %v1111_v37, %v1071_v35  ;;  %v1128_v40 = vsel %vm1127_vm7, 1.0, %v1117_v36  ;;  %v1282_v35 = vsub.f32 %v1238_v6, %v1266_v21  ;;  %v1295_v37 = vpack.c.bf16 %v1285_v27, %v1284_v23  ;;  %v1435_v23 = vld [vmem:[#allocation8 + $0x78] sm:$0xff] }
 0x4b5   : > { %v2581_v39 = vpop.f32.mrf.mxu0  ;;  %v1130_v45 = vmul.f32 %v1128_v40, %v3496_v11  ;;  %v3644_v40 = vpack.c.bf16 %v1235_v33, %v1234_v32 }
 0x4b6   : > { %v1118_v41 = vmax.f32 %v1116_v38, 0.0  ;;  %v1264_v38 = vunpack.c.l.bf16 %v3637_v30  ;;  %v1265_v39 = vunpack.c.h.bf16 %v3637_v30 }
 0x4b7   : > { %2625 = vmatpush3.bf16.msra.mxu0 %v3644_v40 }
 0x4b8   : > { %v1129_v42 = vsel %vm1127_vm7, 1.0, %v1118_v41  ;;  %v3594_v44 = vpack.c.bf16 %v1118_v41, %v1117_v36  ;;  %2626 = vmatprep.subr.bf16.mxu0 %v3210_v1 }
 0x4b9   : > { %v1131_v46 = vmul.f32 %v1129_v42, %v3498_v12  ;;  %v1233_v42 = vld [vmem:[#allocation7 + $0x18] sm:$0xff] }
 0x4ba   : > { %v1913_v47 = vunpack.c.h.bf16 %v3594_v44  ;;  %v1912_v48 = vunpack.c.l.bf16 %v3594_v44 }
 0x4bb   : > { %v1132_v49 = vpack.c.bf16 %v1131_v46, %v1130_v45 }
 0x4bc   : > { %v3602_v50 = vsub.f32 %v1118_v41, %v1913_v47  ;;  %v3604_v51 = vsub.f32 %v1117_v36, %v1912_v48  ;;  %v1283_v36 = vsub.f32 %v1239_v7, %v1267_v22  ;;  %v1232_v41 = vld [vmem:[#allocation7 + $0x10] sm:$0xff]  ;;  %v1280_v47 = vsub.f32 %v1236_v18, %v1264_v38 }
 0x4bd   : > { %v1134_v53 = vunpack.c.h.bf16 %v1132_v49  ;;  %v1133_v54 = vunpack.c.l.bf16 %v1132_v49  ;;  %v1281_v48 = vsub.f32 %v1237_v19, %v1265_v39  ;;  %v1275_v18 = vsub.f32 %v1231_v15, %v1259_v43 }
 0x4be   : > { %v1916_v55 = vpack.c.bf16 %v3602_v50, %v3604_v51 }
 0x4bf   : > { %v1136_v57 = vsub.f32 %v1131_v46, %v1134_v53  ;;  %v1135_v58 = vsub.f32 %v1130_v45, %v1133_v54  ;;  %v1294_v45 = vpack.c.bf16 %v1283_v36, %v1282_v35  ;;  %v3649_v46 = vpack.c.bf16 %v1233_v42, %v1232_v41  ;;  %v1433_v35 = vld [vmem:[#allocation8 + $0x68] sm:$0xff] }
 0x4c0   : > { %v1263_v53 = vunpack.c.h.bf16 %v3644_v40  ;;  %v1293_v56 = vpack.c.bf16 %v1281_v48, %v1280_v47  ;;  %v1290_v19 = vpack.c.bf16 %v1275_v18, %v1274_v52 }
 0x4c1   : > { %v1137_v59 = vpack.c.bf16 %v1136_v57, %v1135_v58  ;;  %v1260_v54 = vunpack.c.l.bf16 %v3649_v46  ;;  %2627 = vmatpush3.bf16.msra.mxu0 %v3649_v46 }
 0x4c2   : > { %v1279_v58 = vsub.f32 %v1235_v33, %v1263_v53  ;;  %2628 = vmatprep.subr.bf16.mxu0 %v3210_v1  ;;  %v1432_v33 = vld [vmem:[#allocation8 + $0x60] sm:$0xff]  ;;  %v1429_v53 = vld [vmem:[#allocation8 + $0x48] sm:$0xff] }
 0x4c3   : > { %2583 = vmatpush3.bf16.msra.mxu1 %v1137_v59  ;;  %v1261_v59 = vunpack.c.h.bf16 %v3649_v46  ;;  %v1276_v16 = vsub.f32 %v1232_v41, %v1260_v54  ;;  %v3695_v38 = vpack.c.bf16 %v1433_v35, %v1432_v33  ;;  %v1426_v54 = vld [vmem:[#allocation8 + $0x30] sm:$0xff] }
 0x4c4   : > { %2588 = vmatprep.subr.bf16.mxu1 %v3210_v1 }
 0x4c5   : > { %v1277_v25 = vsub.f32 %v1233_v42, %v1261_v59  ;;  %2629 = vmatpush3.bf16.msra.mxu0 %v1250_v31  ;;  %v1461_v41 = vunpack.c.h.bf16 %v3695_v38  ;;  %v1430_v42 = vld [vmem:[#allocation8 + $0x50] sm:$0xff]  ;;  %v1424_v59 = vld [vmem:[#allocation8 + $0x20] sm:$0xff] }
 0x4c6   : > { %2585 = vmatmul.mubr.msk.bf16.vlgmr.msra.gmra.mxu1 %vm544_vm12, %v1121_v60  ;;  %2654 = vmatprep.subr.bf16.mxu0 %v3210_v1 }
 0x4c7   : > { %2589 = vmatpush3.bf16.msra.mxu1 %v1132_v49  ;;  %2590 = vmatprep.mubr.msk.bf16.mxu1 %vm3212_vm2, %v3210_v1  ;;  %v1262_v49 = vunpack.c.l.bf16 %v3644_v40  ;;  %v1291_v61 = vpack.c.bf16 %v1277_v25, %v1276_v16  ;;  %v1477_v48 = vsub.f32 %v1433_v35, %v1461_v41 }
 0x4c8   : > { %2594 = vmatprep.subr.bf16.mxu1 %v3210_v1 }
 0x4c9   : > { %v1278_v57 = vsub.f32 %v1234_v32, %v1262_v49 }
 0x4ce   : > { %2591 = vmatmul.mubr.msk.bf16.vlgmr.msra.gmra.mxu1 %vm544_vm12, %v1121_v60  ;;  %v1292_v60 = vpack.c.bf16 %v1279_v58, %v1278_v57 }
 0x4cf   : > { %2610 = vmatprep.mubr.msk.bf16.mxu1 %vm3212_vm2, %v3210_v1  ;;  %2595 = vmatpush3.bf16.msra.mxu1 %v1297_v20 }
 0x4d0   : > { %2596 = vmatprep.subr.bf16.mxu1 %v3210_v1 }
 0x4d3   : > { %2597 = vmatpush3.bf16.msra.mxu1 %v1296_v34 }
 0x4d4   : > { %2598 = vmatprep.subr.bf16.mxu1 %v3210_v1 }
 0x4d7   : > { %2599 = vmatpush3.bf16.msra.mxu1 %v1295_v37 }
 0x4d8   : > { %2600 = vmatprep.subr.bf16.mxu1 %v3210_v1 }
 0x4db   : > { %2601 = vmatpush3.bf16.msra.mxu1 %v1294_v45  ;;  %v1431_v45 = vld [vmem:[#allocation8 + $0x58] sm:$0xff] }
 0x4dc   : > { %2602 = vmatprep.subr.bf16.mxu1 %v3210_v1  ;;  %v3701_v49 = vpack.c.bf16 %v1431_v45, %v1430_v42 }
 0x4de   : > { %v1458_v25 = vunpack.c.l.bf16 %v3701_v49 }
 0x4df   : > { %2603 = vmatpush3.bf16.msra.mxu1 %v1293_v56  ;;  %v1427_v56 = vld [vmem:[#allocation8 + $0x38] sm:$0xff] }
 0x4e0   : > { %2604 = vmatprep.subr.bf16.mxu1 %v3210_v1  ;;  %v3706_v58 = vpack.c.bf16 %v1427_v56, %v1426_v54 }
 0x4e3   : > { %2605 = vmatpush3.bf16.msra.mxu1 %v1292_v60  ;;  %v1425_v60 = vld [vmem:[#allocation8 + $0x28] sm:$0xff] }
 0x4e4   : > { %2606 = vmatprep.subr.bf16.mxu1 %v3210_v1 }
 0x4e7   : > { %2607 = vmatpush3.bf16.msra.mxu1 %v1291_v61  ;;  %v1459_v61 = vunpack.c.h.bf16 %v3701_v49 }
 0x4e8   : > { %2608 = vmatprep.subr.bf16.mxu1 %v3210_v1 }
 0x4eb   : > { %2609 = vmatpush3.bf16.msra.mxu1 %v1290_v19 }
 0x4ec   : > { %2634 = vmatprep.subr.bf16.mxu1 %v3210_v1 }
 0x586   : > { %v1175_v62 = vpop.f32.mrf.mxu1 }
 0x588   : > { %v2586_v0 = vpop.f32.mrf.mxu1 }
 0x58a   : > { %v1178_v2 = vpop.f32.mrf.mxu1 }
 0x58b   : > { %v3714_v2 = vpack.c.bf16 %v1425_v60, %v1424_v59 }
 0x58c   : > { %v2587_v3 = vpop.f32.mrf.mxu1 }
 0x58d   : > { %v1474_v3 = vsub.f32 %v1430_v42, %v1458_v25  ;;  %v1453_v17 = vunpack.c.h.bf16 %v3714_v2 }
 0x58e   : > { %v1215_v6 = vpop.f32.mrf.mxu1 }
 0x58f   : > { %v1216_v7 = vadd.f32 %v1215_v6, %v1175_v62  ;;  %v1475_v6 = vsub.f32 %v1431_v45, %v1459_v61 }
 0x590   : > { %v2592_v8 = vpop.f32.mrf.mxu1 }
 0x591   : > { %v1221_v9 = vmax.f32 %v1216_v7, 1.0  ;;  %v1455_v8 = vunpack.c.h.bf16 %v3706_v58  ;;  %v1485_v15 = vpack.c.bf16 %v1475_v6, %v1474_v3 }
 0x592   : > { %v1218_v10 = vpop.f32.mrf.mxu1 }
 0x593   : > { %2965 = vrcp.f32 %v1221_v9  ;;  %v1471_v18 = vsub.f32 %v1427_v56, %v1455_v8  ;;  %v1623_v8 = vld [vmem:[#allocation11 + $0x68] sm:$0xff] }
 0x594   : > { %v2593_v13 = vpop.f32.mrf.mxu1 }
 0x595   : > { %v1422_v13 = vld [vmem:[#allocation8 + $0x10] sm:$0xff] }
 0x596   : > { %v3723_v19 = vpack.c.bf16 %v1423_v26, %v1422_v13 }
 0x5a0   : > { %v2966_v20 = vpop.eup %2965 }
 0x5a1   : > { %1226 = vperm.xlu1 %2959, %v2966_v20  }
 0x61c   : > { %v1227_v21 = vpop.permute.xlu1 %1226 }
 0x61d   : > { %v1229_v22 = vmul.f32 %v1227_v21, %v1216_v7  ;;  %v1454_v7 = vunpack.c.l.bf16 %v3706_v58 }
 0x61f   : > { %v1246_v34 = vpack.c.bf16 %v1229_v22, %v1229_v22  ;;  %v1470_v52 = vsub.f32 %v1426_v54, %v1454_v7  ;;  %v1622_v7 = vld [vmem:[#allocation11 + $0x60] sm:$0xff] }
 0x621   : > { %2611 = vmatmul.mubr.bf16.vlgmr.msra.gmra.mxu1 %v1246_v34  ;;  %2631 = vmatmul.mubr.bf16.vlgmr.msra.gmra.mxu0 %v1246_v34  ;;  %v1483_v21 = vpack.c.bf16 %v1471_v18, %v1470_v52  ;;  %v1618_v52 = vld [vmem:[#allocation11 + $0x40] sm:$0xff] }
 0x622   : > { %2635 = vmatpush3.bf16.msra.mxu1 %v3617_v63  ;;  %2650 = vmatprep.mubr.msk.bf16.mxu1 %vm3212_vm2, %v3210_v1  ;;  %v1247_v63 = vunpack.c.l.bf16 %v1246_v34  ;;  %v1450_v34 = vunpack.c.l.bf16 %v3723_v19 }
 0x623   : > { %2636 = vmatprep.subr.bf16.mxu1 %v3210_v1  ;;  %2670 = vmatprep.mubr.msk.bf16.mxu0 %vm3212_vm2, %v3210_v1 }
 0x626   : > { %2637 = vmatpush3.bf16.msra.mxu1 %v3619_v4  ;;  %v1248_v4 = vsub.f32 %v1229_v22, %v1247_v63  ;;  %v1469_v22 = vsub.f32 %v1425_v60, %v1453_v17  ;;  %v1451_v63 = vunpack.c.h.bf16 %v3723_v19  ;;  %v1620_v17 = vld [vmem:[#allocation11 + $0x50] sm:$0xff] }
 0x627   : > { %2638 = vmatprep.subr.bf16.mxu1 %v3210_v1 }
 0x62a   : > { %2639 = vmatpush3.bf16.msra.mxu1 %v3621_v5  ;;  %v1249_v5 = vpack.c.bf16 %v1248_v4, %v1248_v4 }
 0x62b   : > { %2640 = vmatprep.subr.bf16.mxu1 %v3210_v1 }
 0x62e   : > { %2641 = vmatpush3.bf16.msra.mxu1 %v3629_v14  ;;  %v1434_v14 = vld [vmem:[#allocation8 + $0x70] sm:$0xff] }
 0x62f   : > { %2642 = vmatprep.subr.bf16.mxu1 %v3210_v1  ;;  %v3689_v27 = vpack.c.bf16 %v1435_v23, %v1434_v14 }
 0x631   : > { %v1463_v32 = vunpack.c.h.bf16 %v3689_v27 }
 0x632   : > { %2643 = vmatpush3.bf16.msra.mxu1 %v3637_v30  ;;  %v1462_v30 = vunpack.c.l.bf16 %v3689_v27 }
 0x633   : > { %2644 = vmatprep.subr.bf16.mxu1 %v3210_v1  ;;  %v1479_v37 = vsub.f32 %v1435_v23, %v1463_v32  ;;  %v1420_v23 = vld [vmem:[#allocation8] sm:$0xff] }
 0x634   : > { %v1478_v36 = vsub.f32 %v1434_v14, %v1462_v30  ;;  %v1467_v14 = vsub.f32 %v1423_v26, %v1451_v63  ;;  %v1421_v30 = vld [vmem:[#allocation8 + $0x8] sm:$0xff] }
 0x636   : > { %2645 = vmatpush3.bf16.msra.mxu1 %v3644_v40  ;;  %v1487_v39 = vpack.c.bf16 %v1479_v37, %v1478_v36  ;;  %v1460_v40 = vunpack.c.l.bf16 %v3695_v38 }
 0x637   : > { %2646 = vmatprep.subr.bf16.mxu1 %v3210_v1 }
 0x638   : > { %2655 = vmatpush3.bf16.msra.mxu0 %v1487_v39  ;;  %v1476_v47 = vsub.f32 %v1432_v33, %v1460_v40  ;;  %v1440_v33 = vpack.c.bf16 %v1421_v30, %v1420_v23 }
 0x639   : > { %2656 = vmatprep.subr.bf16.mxu0 %v3210_v1 }
 0x63a   : > { %2647 = vmatpush3.bf16.msra.mxu1 %v3649_v46  ;;  %v1428_v46 = vld [vmem:[#allocation8 + $0x40] sm:$0xff]  ;;  %v1486_v16 = vpack.c.bf16 %v1477_v48, %v1476_v47  ;;  %v1448_v35 = vunpack.c.l.bf16 %v1440_v33  ;;  %v1449_v36 = vunpack.c.h.bf16 %v1440_v33 }
 0x63b   : > { %2648 = vmatprep.subr.bf16.mxu1 %v3210_v1  ;;  %v3704_v57 = vpack.c.bf16 %v1429_v53, %v1428_v46 }
 0x63c   : > { %2657 = vmatpush3.bf16.msra.mxu0 %v1486_v16  ;;  %v1464_v37 = vsub.f32 %v1420_v23, %v1448_v35  ;;  %v1465_v39 = vsub.f32 %v1421_v30, %v1449_v36 }
 0x63d   : > { %v1456_v62 = vunpack.c.l.bf16 %v3704_v57  ;;  %v1457_v0 = vunpack.c.h.bf16 %v3704_v57  ;;  %2658 = vmatprep.subr.bf16.mxu0 %v3210_v1 }
 0x63e   : > { %2649 = vmatpush3.bf16.msra.mxu1 %v1250_v31  ;;  %v1452_v31 = vunpack.c.l.bf16 %v3714_v2  ;;  %v1480_v40 = vpack.c.bf16 %v1465_v39, %v1464_v37 }
 0x63f   : > { %2674 = vmatprep.subr.bf16.mxu1 %v3210_v1  ;;  %v1472_v9 = vsub.f32 %v1428_v46, %v1456_v62  ;;  %v1473_v10 = vsub.f32 %v1429_v53, %v1457_v0 }
 0x640   : > { %2659 = vmatpush3.bf16.msra.mxu0 %v1485_v15  ;;  %v1468_v20 = vsub.f32 %v1424_v59, %v1452_v31 }
 0x641   : > { %2651 = vmatmul.mubr.bf16.vlgmr.msra.gmra.mxu1 %v1249_v5  ;;  %v1484_v43 = vpack.c.bf16 %v1473_v10, %v1472_v9  ;;  %2660 = vmatprep.subr.bf16.mxu0 %v3210_v1  ;;  %v1466_v5 = vsub.f32 %v1422_v13, %v1450_v34  ;;  %v3767_v13 = vpack.c.bf16 %v1623_v8, %v1622_v7  ;;  %v1617_v34 = vld [vmem:[#allocation11 + $0x38] sm:$0xff] }
 0x642   : > { %2690 = vmatprep.mubr.msk.bf16.mxu1 %vm3212_vm2, %v3210_v1  ;;  %2675 = vmatpush3.bf16.msra.mxu1 %v3689_v27  ;;  %v1482_v4 = vpack.c.bf16 %v1469_v22, %v1468_v20  ;;  %v1616_v22 = vld [vmem:[#allocation11 + $0x30] sm:$0xff] }
 0x643   : > { %2676 = vmatprep.subr.bf16.mxu1 %v3210_v1  ;;  %v1481_v32 = vpack.c.bf16 %v1467_v14, %v1466_v5  ;;  %v1650_v15 = vunpack.c.l.bf16 %v3767_v13  ;;  %v1651_v31 = vunpack.c.h.bf16 %v3767_v13  ;;  %v1614_v5 = vld [vmem:[#allocation11 + $0x20] sm:$0xff]  ;;  %v1615_v14 = vld [vmem:[#allocation11 + $0x28] sm:$0xff] }
 0x644   : > { %2661 = vmatpush3.bf16.msra.mxu0 %v1484_v43  ;;  %v1621_v43 = vld [vmem:[#allocation11 + $0x58] sm:$0xff]  ;;  %v3786_v36 = vpack.c.bf16 %v1615_v14, %v1614_v5 }
 0x645   : > { %2662 = vmatprep.subr.bf16.mxu0 %v3210_v1  ;;  %v1666_v18 = vsub.f32 %v1622_v7, %v1650_v15  ;;  %v3773_v20 = vpack.c.bf16 %v1621_v43, %v1620_v17 }
 0x646   : > { %2677 = vmatpush3.bf16.msra.mxu1 %v3695_v38 }
 0x647   : > { %2678 = vmatprep.subr.bf16.mxu1 %v3210_v1  ;;  %v1648_v30 = vunpack.c.l.bf16 %v3773_v20 }
 0x648   : > { %2663 = vmatpush3.bf16.msra.mxu0 %v1483_v21  ;;  %v1619_v21 = vld [vmem:[#allocation11 + $0x48] sm:$0xff] }
 0x649   : > { %2664 = vmatprep.subr.bf16.mxu0 %v3210_v1  ;;  %v3776_v63 = vpack.c.bf16 %v1619_v21, %v1618_v52  ;;  %v1664_v37 = vsub.f32 %v1620_v17, %v1648_v30 }
 0x64a   : > { %2679 = vmatpush3.bf16.msra.mxu1 %v3701_v49 }
 0x64b   : > { %2680 = vmatprep.subr.bf16.mxu1 %v3210_v1  ;;  %v1647_v35 = vunpack.c.h.bf16 %v3776_v63 }
 0x64c   : > { %2665 = vmatpush3.bf16.msra.mxu0 %v1482_v4  ;;  %v3778_v4 = vpack.c.bf16 %v1617_v34, %v1616_v22 }
 0x64d   : > { %2666 = vmatprep.subr.bf16.mxu0 %v3210_v1 }
 0x64e   : > { %2681 = vmatpush3.bf16.msra.mxu1 %v3704_v57 }
 0x64f   : > { %2682 = vmatprep.subr.bf16.mxu1 %v3210_v1 }
 0x650   : > { %2667 = vmatpush3.bf16.msra.mxu0 %v1481_v32  ;;  %v1649_v32 = vunpack.c.h.bf16 %v3773_v20 }
 0x651   : > { %2668 = vmatprep.subr.bf16.mxu0 %v3210_v1 }
 0x652   : > { %2683 = vmatpush3.bf16.msra.mxu1 %v3706_v58  ;;  %v1665_v39 = vsub.f32 %v1621_v43, %v1649_v32 }
 0x653   : > { %2684 = vmatprep.subr.bf16.mxu1 %v3210_v1 }
 0x654   : > { %2669 = vmatpush3.bf16.msra.mxu0 %v1480_v40  ;;  %v1644_v40 = vunpack.c.l.bf16 %v3778_v4 }
 0x655   : > { %2694 = vmatprep.subr.bf16.mxu0 %v3210_v1 }
 0x656   : > { %2685 = vmatpush3.bf16.msra.mxu1 %v3714_v2 }
 0x657   : > { %2686 = vmatprep.subr.bf16.mxu1 %v3210_v1 }
 0x65a   : > { %2687 = vmatpush3.bf16.msra.mxu1 %v3723_v19 }
 0x65b   : > { %2688 = vmatprep.subr.bf16.mxu1 %v3210_v1 }
 0x65e   : > { %2689 = vmatpush3.bf16.msra.mxu1 %v1440_v33 }
 0x65f   : > { %2714 = vmatprep.subr.bf16.mxu1 %v3210_v1 }
 0x6e1   : > { %v1332_v41 = vpop.f32.mrf.mxu1  ;;  %v1372_v42 = vpop.f32.mrf.mxu0 }
 0x6e2   : > { %v1373_v56 = vadd.f32 %v1372_v42, %v1332_v41  ;;  %v1645_v41 = vunpack.c.h.bf16 %v3778_v4 }
 0x6e3   : > { %v2612_v45 = vpop.f32.mrf.mxu1  ;;  %v2632_v46 = vpop.f32.mrf.mxu0 }
 0x6e4   : > { %v1663_v45 = vsub.f32 %v1619_v21, %v1647_v35  ;;  %v1612_v46 = vld [vmem:[#allocation11 + $0x10] sm:$0xff] }
 0x6e5   : > { %v1335_v47 = vpop.f32.mrf.mxu1  ;;  %v1375_v48 = vpop.f32.mrf.mxu0 }
 0x6e6   : > { %v1613_v47 = vld [vmem:[#allocation11 + $0x18] sm:$0xff]  ;;  %v1675_v48 = vpack.c.bf16 %v1665_v39, %v1664_v37  ;;  %v3841_v39 = vld [vmem:[#allocation10 + $0x68] sm:$0xff] }
 0x6e7   : > { %v2613_v53 = vpop.f32.mrf.mxu1  ;;  %v2633_v54 = vpop.f32.mrf.mxu0  ;;  %v3832_v37 = vld [vmem:[#allocation10 + $0x78] sm:$0xff] }
 0x6e8   : > { %v1642_v53 = vunpack.c.l.bf16 %v3786_v36  ;;  %v1643_v54 = vunpack.c.h.bf16 %v3786_v36 }
 0x701   : > { %v1412_v59 = vpop.f32.mrf.mxu1 }
 0x702   : > { %v1418_v60 = vadd.f32 %v1412_v59, %v1373_v56  ;;  %v1660_v59 = vsub.f32 %v1616_v22, %v1644_v40 }
 0x703   : > { %v2652_v16 = vpop.f32.mrf.mxu1 }
 0x704   : > { %v1419_v25 = vmax.f32 %v1418_v60, 0.0  ;;  %v1661_v60 = vsub.f32 %v1617_v34, %v1645_v41  ;;  %v3795_v16 = vpack.c.bf16 %v1613_v47, %v1612_v46  ;;  %v3851_v41 = vld [vmem:[#allocation10 + $0x50] sm:$0xff] }
 0x705   : > { %v1415_v61 = vpop.f32.mrf.mxu1 }
 0x706   : > { %v1436_v62 = vpack.c.bf16 %v1419_v25, %v1419_v25  ;;  %v1673_v61 = vpack.c.bf16 %v1661_v60, %v1660_v59  ;;  %v3881_v59 = vld [vmem:[#allocation10 + $0x20] sm:$0xff]  ;;  %v3883_v60 = vld [vmem:[#allocation10 + $0x28] sm:$0xff] }
 0x707   : > { %v2653_v0 = vpop.f32.mrf.mxu1 }
 0x708   : > { %2671 = vmatmul.mubr.bf16.vlgmr.msra.gmra.mxu0 %v1436_v62  ;;  %2691 = vmatmul.mubr.bf16.vlgmr.msra.gmra.mxu1 %v1436_v62  ;;  %v1640_v0 = vunpack.c.l.bf16 %v3795_v16 }
 0x709   : > { %2695 = vmatpush3.bf16.msra.mxu0 %v3689_v27  ;;  %2710 = vmatprep.mubr.msk.bf16.mxu0 %vm3212_vm2, %v3210_v1  ;;  %v1437_v27 = vunpack.c.l.bf16 %v1436_v62  ;;  %v1659_v62 = vsub.f32 %v1615_v14, %v1643_v54  ;;  %v3873_v54 = vld [vmem:[#allocation10 + $0x38] sm:$0xff] }
 0x70a   : > { %2696 = vmatprep.subr.bf16.mxu0 %v3210_v1  ;;  %2730 = vmatprep.mubr.msk.bf16.mxu1 %vm3212_vm2, %v3210_v1 }
 0x70d   : > { %2697 = vmatpush3.bf16.msra.mxu0 %v3695_v38  ;;  %v1438_v38 = vsub.f32 %v1419_v25, %v1437_v27  ;;  %v1658_v25 = vsub.f32 %v1614_v5, %v1642_v53  ;;  %v1641_v27 = vunpack.c.h.bf16 %v3795_v16  ;;  %v3871_v53 = vld [vmem:[#allocation10 + $0x30] sm:$0xff] }
 0x70e   : > { %2698 = vmatprep.subr.bf16.mxu0 %v3210_v1 }
 0x711   : > { %2699 = vmatpush3.bf16.msra.mxu0 %v3701_v49  ;;  %v1439_v49 = vpack.c.bf16 %v1438_v38, %v1438_v38  ;;  %v1672_v38 = vpack.c.bf16 %v1659_v62, %v1658_v25  ;;  %v3891_v25 = vld [vmem:[#allocation10 + $0x10] sm:$0xff] }
 0x712   : > { %2700 = vmatprep.subr.bf16.mxu0 %v3210_v1 }
 0x715   : > { %2701 = vmatpush3.bf16.msra.mxu0 %v3704_v57  ;;  %v1624_v57 = vld [vmem:[#allocation11 + $0x70] sm:$0xff] }
 0x716   : > { %2702 = vmatprep.subr.bf16.mxu0 %v3210_v1 }
 0x719   : > { %2703 = vmatpush3.bf16.msra.mxu0 %v3706_v58  ;;  %v1625_v58 = vld [vmem:[#allocation11 + $0x78] sm:$0xff] }
 0x71a   : > { %2704 = vmatprep.subr.bf16.mxu0 %v3210_v1  ;;  %v3761_v3 = vpack.c.bf16 %v1625_v58, %v1624_v57 }
 0x71c   : > { %v1653_v6 = vunpack.c.h.bf16 %v3761_v3 }
 0x71d   : > { %2705 = vmatpush3.bf16.msra.mxu0 %v3714_v2  ;;  %v1652_v2 = vunpack.c.l.bf16 %v3761_v3 }
 0x71e   : > { %2706 = vmatprep.subr.bf16.mxu0 %v3210_v1  ;;  %v1669_v10 = vsub.f32 %v1625_v58, %v1653_v6  ;;  %v1610_v58 = vld [vmem:[#allocation11] sm:$0xff] }
 0x71f   : > { %v1668_v9 = vsub.f32 %v1624_v57, %v1652_v2  ;;  %v1657_v57 = vsub.f32 %v1613_v47, %v1641_v27  ;;  %v1611_v2 = vld [vmem:[#allocation11 + $0x8] sm:$0xff] }
 0x720   : > { %v1630_v7 = vpack.c.bf16 %v1611_v2, %v1610_v58  ;;  %v3863_v47 = vld [vmem:[#allocation10 + $0x48] sm:$0xff] }
 0x721   : > { %2707 = vmatpush3.bf16.msra.mxu0 %v3723_v19  ;;  %v1677_v26 = vpack.c.bf16 %v1669_v10, %v1668_v9  ;;  %v1667_v19 = vsub.f32 %v1623_v8, %v1651_v31  ;;  %v3903_v27 = vld [vmem:[#allocation10 + $0x8] sm:$0xff] }
 0x722   : > { %2708 = vmatprep.subr.bf16.mxu0 %v3210_v1  ;;  %v1638_v8 = vunpack.c.l.bf16 %v1630_v7  ;;  %v1639_v9 = vunpack.c.h.bf16 %v1630_v7 }
 0x723   : > { %2715 = vmatpush3.bf16.msra.mxu1 %v1677_v26  ;;  %v1676_v23 = vpack.c.bf16 %v1667_v19, %v1666_v18 }
 0x724   : > { %2716 = vmatprep.subr.bf16.mxu1 %v3210_v1  ;;  %v1654_v10 = vsub.f32 %v1610_v58, %v1638_v8  ;;  %v1655_v26 = vsub.f32 %v1611_v2, %v1639_v9 }
 0x725   : > { %2709 = vmatpush3.bf16.msra.mxu0 %v1440_v33  ;;  %v1646_v33 = vunpack.c.l.bf16 %v3776_v63 }
 0x726   : > { %2734 = vmatprep.subr.bf16.mxu0 %v3210_v1  ;;  %v1670_v15 = vpack.c.bf16 %v1655_v26, %v1654_v10 }
 0x727   : > { %2717 = vmatpush3.bf16.msra.mxu1 %v1676_v23  ;;  %v1662_v42 = vsub.f32 %v1618_v52, %v1646_v33 }
 0x728   : > { %2711 = vmatmul.mubr.bf16.vlgmr.msra.gmra.mxu0 %v1439_v49  ;;  %2718 = vmatprep.subr.bf16.mxu1 %v3210_v1  ;;  %v1656_v49 = vsub.f32 %v1612_v46, %v1640_v0  ;;  %v3861_v46 = vld [vmem:[#allocation10 + $0x40] sm:$0xff] }
 0x729   : > { %2750 = vmatprep.mubr.msk.bf16.mxu0 %vm3212_vm2, %v3210_v1  ;;  %2735 = vmatpush3.bf16.msra.mxu0 %v3761_v3  ;;  %v1674_v56 = vpack.c.bf16 %v1663_v45, %v1662_v42  ;;  %v3853_v42 = vld [vmem:[#allocation10 + $0x58] sm:$0xff]  ;;  %v3901_v0 = vld [vmem:[#allocation10] sm:$0xff] }
 0x72a   : > { %2736 = vmatprep.subr.bf16.mxu0 %v3210_v1  ;;  %v1671_v6 = vpack.c.bf16 %v1657_v57, %v1656_v49  ;;  %v3858_v45 = vpack.c.bf16 %v3853_v42, %v3851_v41 }
 0x72b   : > { %2719 = vmatpush3.bf16.msra.mxu1 %v1675_v48  ;;  %v3868_v48 = vpack.c.bf16 %v3863_v47, %v3861_v46 }
 0x72c   : > { %2720 = vmatprep.subr.bf16.mxu1 %v3210_v1 }
 0x72d   : > { %2737 = vmatpush3.bf16.msra.mxu0 %v3767_v13 }
 0x72e   : > { %2738 = vmatprep.subr.bf16.mxu0 %v3210_v1 }
 0x72f   : > { %2721 = vmatpush3.bf16.msra.mxu1 %v1674_v56  ;;  %v3878_v56 = vpack.c.bf16 %v3873_v54, %v3871_v53 }
 0x730   : > { %2722 = vmatprep.subr.bf16.mxu1 %v3210_v1 }
 0x731   : > { %2739 = vmatpush3.bf16.msra.mxu0 %v3773_v20 }
 0x732   : > { %2740 = vmatprep.subr.bf16.mxu0 %v3210_v1 }
 0x733   : > { %2723 = vmatpush3.bf16.msra.mxu1 %v1673_v61  ;;  %v3893_v61 = vld [vmem:[#allocation10 + $0x18] sm:$0xff] }
 0x734   : > { %2724 = vmatprep.subr.bf16.mxu1 %v3210_v1  ;;  %v3898_v62 = vpack.c.bf16 %v3893_v61, %v3891_v25 }
 0x735   : > { %2741 = vmatpush3.bf16.msra.mxu0 %v3776_v63 }
 0x736   : > { %2742 = vmatprep.subr.bf16.mxu0 %v3210_v1 }
 0x737   : > { %2725 = vmatpush3.bf16.msra.mxu1 %v1672_v38  ;;  %v3908_v38 = vpack.c.bf16 %v3903_v27, %v3901_v0 }
 0x738   : > { %2726 = vmatprep.subr.bf16.mxu1 %v3210_v1 }
 0x739   : > { %2743 = vmatpush3.bf16.msra.mxu0 %v3778_v4 }
 0x73a   : > { %2744 = vmatprep.subr.bf16.mxu0 %v3210_v1 }
 0x73b   : > { %2727 = vmatpush3.bf16.msra.mxu1 %v1671_v6 }
 0x73c   : > { %2728 = vmatprep.subr.bf16.mxu1 %v3210_v1 }
 0x73d   : > { %2745 = vmatpush3.bf16.msra.mxu0 %v3786_v36 }
 0x73e   : > { %2746 = vmatprep.subr.bf16.mxu0 %v3210_v1 }
 0x73f   : > { %2729 = vmatpush3.bf16.msra.mxu1 %v1670_v15 }
 0x740   : > { %2754 = vmatprep.subr.bf16.mxu1 %v3210_v1 }
 0x741   : > { %2747 = vmatpush3.bf16.msra.mxu0 %v3795_v16 }
 0x742   : > { %2748 = vmatprep.subr.bf16.mxu0 %v3210_v1 }
 0x745   : > { %2749 = vmatpush3.bf16.msra.mxu0 %v1630_v7 }
 0x746   : > { %2774 = vmatprep.subr.bf16.mxu0 %v3210_v1 }
 0x7c8   : > { %v1522_v31 = vpop.f32.mrf.mxu0  ;;  %v1562_v17 = vpop.f32.mrf.mxu1 }
 0x7c9   : > { %v1563_v34 = vadd.f32 %v1562_v17, %v1522_v31 }
 0x7ca   : > { %v2672_v43 = vpop.f32.mrf.mxu0  ;;  %v2692_v52 = vpop.f32.mrf.mxu1 }
 0x7cc   : > { %v1525_v18 = vpop.f32.mrf.mxu0  ;;  %v1565_v19 = vpop.f32.mrf.mxu1 }
 0x7ce   : > { %v2673_v21 = vpop.f32.mrf.mxu0  ;;  %v2693_v22 = vpop.f32.mrf.mxu1 }
 0x7cf   : > { %v1124_v22 = vsel %vm1122_vm9, 1.0, %v3210_v1 }
 0x7e8   : > { %v1602_v5 = vpop.f32.mrf.mxu0 }
 0x7e9   : > { %v1608_v14 = vadd.f32 %v1602_v5, %v1563_v34  ;;  %v1125_v34 = vsel %vm1123_vm10, 1.0, %v3210_v1 }
 0x7ea   : > { %v2712_v23 = vpop.f32.mrf.mxu0 }
 0x7eb   : > { %v1609_v30 = vmax.f32 %v1608_v14, 0.0 }
 0x7ec   : > { %v1605_v32 = vpop.f32.mrf.mxu0 }
 0x7ed   : > { %v1626_v33 = vpack.c.bf16 %v1609_v30, %v1609_v30 }
 0x7ee   : > { %v2713_v35 = vpop.f32.mrf.mxu0 }
 0x7ef   : > { %2731 = vmatmul.mubr.bf16.vlgmr.msra.gmra.mxu1 %v1626_v33  ;;  %2751 = vmatmul.mubr.bf16.vlgmr.msra.gmra.mxu0 %v1626_v33  ;;  %v1935_v35 = vunpack.c.l.bf16 %v3858_v45 }
 0x7f0   : > { %2755 = vmatpush3.bf16.msra.mxu1 %v3761_v3  ;;  %2770 = vmatprep.mubr.msk.bf16.mxu1 %vm3212_vm2, %v3210_v1  ;;  %v1627_v3 = vunpack.c.l.bf16 %v1626_v33 }
 0x7f1   : > { %2756 = vmatprep.subr.bf16.mxu1 %v3210_v1  ;;  %2776 = vmatprep.mubr.msk.bf16.mxu0 %vm3212_vm2, %v3210_v1 }
 0x7f4   : > { %2757 = vmatpush3.bf16.msra.mxu1 %v3767_v13  ;;  %v1628_v13 = vsub.f32 %v1609_v30, %v1627_v3  ;;  %v1126_v30 = vpack.c.bf16 %v1125_v34, %v1124_v22  ;;  %v1936_v3 = vunpack.c.h.bf16 %v3858_v45 }
 0x7f5   : > { %2758 = vmatprep.subr.bf16.mxu1 %v3210_v1 }
 0x7f8   : > { %2759 = vmatpush3.bf16.msra.mxu1 %v3773_v20  ;;  %v3830_v20 = vld [vmem:[#allocation10 + $0x70] sm:$0xff] }
 0x7f9   : > { %2760 = vmatprep.subr.bf16.mxu1 %v3210_v1 }
 0x7fc   : > { %2761 = vmatpush3.bf16.msra.mxu1 %v3776_v63  ;;  %v3836_v63 = vpack.c.bf16 %v3832_v37, %v3830_v20 }
 0x7fd   : > { %2762 = vmatprep.subr.bf16.mxu1 %v3210_v1 }
 0x7fe   : > { %v1939_v14 = vunpack.c.l.bf16 %v3836_v63  ;;  %v1940_v23 = vunpack.c.h.bf16 %v3836_v63 }
 0x800   : > { %2763 = vmatpush3.bf16.msra.mxu1 %v3778_v4  ;;  %v1629_v4 = vpack.c.bf16 %v1628_v13, %v1628_v13  ;;  %v1955_v28 = vsub.f32 %v3830_v20, %v1939_v14  ;;  %v1956_v29 = vsub.f32 %v3832_v37, %v1940_v23  ;;  %v1951_v20 = vsub.f32 %v3851_v41, %v1935_v35 }
 0x801   : > { %2764 = vmatprep.subr.bf16.mxu1 %v3210_v1  ;;  %v1952_v37 = vsub.f32 %v3853_v42, %v1936_v3  ;;  %v1931_v41 = vunpack.c.l.bf16 %v3878_v56  ;;  %v1932_v42 = vunpack.c.h.bf16 %v3878_v56 }
 0x802   : > { %v1964_v13 = vpack.c.bf16 %v1956_v29, %v1955_v28 }
 0x804   : > { %2765 = vmatpush3.bf16.msra.mxu1 %v3786_v36  ;;  %v3839_v36 = vld [vmem:[#allocation10 + $0x60] sm:$0xff] }
 0x805   : > { %2766 = vmatprep.subr.bf16.mxu1 %v3210_v1  ;;  %v3846_v40 = vpack.c.bf16 %v3841_v39, %v3839_v36 }
 0x807   : > { %v1937_v32 = vunpack.c.l.bf16 %v3846_v40  ;;  %v1938_v33 = vunpack.c.h.bf16 %v3846_v40 }
 0x808   : > { %2767 = vmatpush3.bf16.msra.mxu1 %v3795_v16  ;;  %v3888_v16 = vpack.c.bf16 %v3883_v60, %v3881_v59 }
 0x809   : > { %2768 = vmatprep.subr.bf16.mxu1 %v3210_v1 }
 0x80c   : > { %2769 = vmatpush3.bf16.msra.mxu1 %v1630_v7 }
 0x80d   : > { %2806 = vmatprep.subr.bf16.mxu1 %v3210_v1 }
 0x80f   : > { %2771 = vmatmul.mubr.bf16.vlgmr.msra.gmra.mxu1 %v1629_v4  ;;  %v1953_v4 = vsub.f32 %v3839_v36, %v1937_v32  ;;  %v1962_v36 = vpack.c.bf16 %v1952_v37, %v1951_v20 }
 0x810   : > { %2807 = vmatpush3.bf16.msra.mxu1 %v3836_v63  ;;  %2822 = vmatprep.mubr.msk.bf16.mxu1 %vm3212_vm2, %v3210_v1 }
 0x811   : > { %2808 = vmatprep.subr.bf16.mxu1 %v3210_v1 }
 0x814   : > { %2809 = vmatpush3.bf16.msra.mxu1 %v3846_v40 }
 0x815   : > { %2810 = vmatprep.subr.bf16.mxu1 %v3210_v1 }
 0x818   : > { %2811 = vmatpush3.bf16.msra.mxu1 %v3858_v45 }
 0x819   : > { %2812 = vmatprep.subr.bf16.mxu1 %v3210_v1 }
 0x81c   : > { %2813 = vmatpush3.bf16.msra.mxu1 %v3868_v48 }
 0x81d   : > { %2814 = vmatprep.subr.bf16.mxu1 %v3210_v1 }
 0x820   : > { %2815 = vmatpush3.bf16.msra.mxu1 %v3878_v56 }
 0x821   : > { %2816 = vmatprep.subr.bf16.mxu1 %v3210_v1 }
 0x824   : > { %2817 = vmatpush3.bf16.msra.mxu1 %v3888_v16 }
 0x825   : > { %2818 = vmatprep.subr.bf16.mxu1 %v3210_v1 }
 0x828   : > { %2819 = vmatpush3.bf16.msra.mxu1 %v3898_v62 }
 0x829   : > { %2820 = vmatprep.subr.bf16.mxu1 %v3210_v1 }
 0x82c   : > { %2821 = vmatpush3.bf16.msra.mxu1 %v3908_v38 }
 0x82f   : > { %2823 = vmatmul.mubr.bf16.vlgmr.msra.gmra.mxu1 %v3594_v44 }
 0x8af   : > { %v1712_v49 = vpop.f32.mrf.mxu1  ;;  %v1752_v57 = vpop.f32.mrf.mxu0 }
 0x8b0   : > { %v1753_v10 = vadd.f32 %v1752_v57, %v1712_v49  ;;  %v1954_v49 = vsub.f32 %v3841_v39, %v1938_v33 }
 0x8b1   : > { %v2732_v58 = vpop.f32.mrf.mxu1  ;;  %v2752_v2 = vpop.f32.mrf.mxu0 }
 0x8b2   : > { %v1963_v57 = vpack.c.bf16 %v1954_v49, %v1953_v4  ;;  %v1933_v58 = vunpack.c.l.bf16 %v3868_v48  ;;  %v1934_v2 = vunpack.c.h.bf16 %v3868_v48 }
 0x8b3   : > { %v1715_v6 = vpop.f32.mrf.mxu1  ;;  %v1755_v7 = vpop.f32.mrf.mxu0 }
 0x8b4   : > { %v1949_v39 = vsub.f32 %v3861_v46, %v1933_v58  ;;  %v1950_v6 = vsub.f32 %v3863_v47, %v1934_v2  ;;  %v1929_v7 = vunpack.c.l.bf16 %v3888_v16  ;;  %v1948_v46 = vsub.f32 %v3873_v54, %v1932_v42 }
 0x8b5   : > { %v2733_v8 = vpop.f32.mrf.mxu1  ;;  %v2753_v9 = vpop.f32.mrf.mxu0 }
 0x8b6   : > { %v1930_v8 = vunpack.c.h.bf16 %v3888_v16 }
 0x8cf   : > { %v1792_v26 = vpop.f32.mrf.mxu1 }
 0x8d0   : > { %v1798_v15 = vadd.f32 %v1792_v26, %v1753_v10  ;;  %v1961_v10 = vpack.c.bf16 %v1950_v6, %v1949_v39  ;;  %v1947_v26 = vsub.f32 %v3871_v53, %v1931_v41 }
 0x8d1   : > { %v2772_v31 = vpop.f32.mrf.mxu1 }
 0x8d2   : > { %v1799_v17 = vpack.c.bf16 %v1798_v15, %v1798_v15  ;;  %v1946_v31 = vsub.f32 %v3883_v60, %v1930_v8  ;;  %v1926_v60 = vunpack.c.h.bf16 %v3908_v38 }
 0x8d3   : > { %v1795_v43 = vpop.f32.mrf.mxu1 }
 0x8d4   : > { %v1800_v52 = vunpack.c.l.bf16 %v1799_v17  ;;  %v1852_v24 = vsel %vm695_vm3, %v1799_v17, 0  ;;  %v1960_v43 = vpack.c.bf16 %v1948_v46, %v1947_v26 }
 0x8d5   : > { %v2773_v18 = vpop.f32.mrf.mxu1 }
 0x8d6   : > { %v1801_v19 = vsub.f32 %v1798_v15, %v1800_v52  ;;  %v1945_v15 = vsub.f32 %v3881_v59, %v1929_v7  ;;  %v1927_v52 = vunpack.c.l.bf16 %v3898_v62  ;;  %v1928_v18 = vunpack.c.h.bf16 %v3898_v62 }
 0x8d7   : > { %v1925_v59 = vunpack.c.l.bf16 %v3908_v38 }
 0x8d8   : > { %v1802_v21 = vpack.c.bf16 %v1801_v19, %v1801_v19  ;;  %v1959_v19 = vpack.c.bf16 %v1946_v31, %v1945_v15  ;;  %v1943_v54 = vsub.f32 %v3891_v25, %v1927_v52 }
 0x8d9   : > { %v1941_v34 = vsub.f32 %v3901_v0, %v1925_v59 }
 0x8da   : > { %v1808_v5 = vsel %vm695_vm3, %v1802_v21, 0  ;;  %v1944_v21 = vsub.f32 %v3893_v61, %v1928_v18 }
 0x8db   : > { %2775 = vmatpush3.bf16.msra.mxu0 %v1808_v5  ;;  %v1942_v5 = vsub.f32 %v3903_v27, %v1926_v60 }
 0x8dc   : > { %2780 = vmatprep.subr.bf16.mxu0 %v3210_v1  ;;  %v1958_v22 = vpack.c.bf16 %v1944_v21, %v1943_v54 }
 0x8dd   : > { %v1957_v14 = vpack.c.bf16 %v1942_v5, %v1941_v34 }
 0x8de   : > { %2777 = vmatmul.mubr.msk.bf16.vlgmr.msra.gmra.mxu0 %vm1803_vm11, %v1126_v30 }
 0x8df   : > { %2781 = vmatpush3.bf16.msra.mxu0 %v1852_v24  ;;  %2782 = vmatprep.mubr.msk.bf16.mxu0 %vm3212_vm2, %v3210_v1 }
 0x8e0   : > { %2786 = vmatprep.subr.bf16.mxu0 %v3210_v1 }
 0x8e6   : > { %2783 = vmatmul.mubr.msk.bf16.vlgmr.msra.gmra.mxu0 %vm1803_vm11, %v1126_v30  ;;  %v2298_v30 = vld [vmem:[%s4059_s9] ss:$0 sm:$0xff] }
 0x8e7   : > { %2787 = vmatpush3.bf16.msra.mxu0 %v1964_v13  ;;  %2802 = vmatprep.mubr.msk.bf16.mxu0 %vm3212_vm2, %v3210_v1 }
 0x8e8   : > { %2788 = vmatprep.subr.bf16.mxu0 %v3210_v1 }
 0x8eb   : > { %2789 = vmatpush3.bf16.msra.mxu0 %v1963_v57 }
 0x8ec   : > { %2790 = vmatprep.subr.bf16.mxu0 %v3210_v1 }
 0x8ef   : > { %2791 = vmatpush3.bf16.msra.mxu0 %v1962_v36  ;;  %v3951_v9 = vpop.f32.mrf.mxu1 }
 0x8f0   : > { %2792 = vmatprep.subr.bf16.mxu0 %v3210_v1 }
 0x8f1   : > { %v2824_v47 = vpop.f32.mrf.mxu1 }
 0x8f3   : > { %2793 = vmatpush3.bf16.msra.mxu0 %v1961_v10  ;;  %v3958_v17 = vpop.f32.mrf.mxu1 }
 0x8f4   : > { %2794 = vmatprep.subr.bf16.mxu0 %v3210_v1 }
 0x8f5   : > { %v2825_v53 = vpop.f32.mrf.mxu1 }
 0x8f7   : > { %2795 = vmatpush3.bf16.msra.mxu0 %v1960_v43 }
 0x8f8   : > { %2796 = vmatprep.subr.bf16.mxu0 %v3210_v1 }
 0x8fb   : > { %2797 = vmatpush3.bf16.msra.mxu0 %v1959_v19 }
 0x8fc   : > { %2798 = vmatprep.subr.bf16.mxu0 %v3210_v1 }
 0x8ff   : > { %2799 = vmatpush3.bf16.msra.mxu0 %v1958_v22 }
 0x900   : > { %2800 = vmatprep.subr.bf16.mxu0 %v3210_v1 }
 0x903   : > { %2801 = vmatpush3.bf16.msra.mxu0 %v1957_v14 }
 0x904   : > { %2826 = vmatprep.subr.bf16.mxu0 %v3210_v1 }
 0x906   : > { %2803 = vmatmul.mubr.bf16.vlgmr.msra.gmra.mxu0 %v3594_v44 }
 0x907   : > { %2827 = vmatpush3.bf16.msra.mxu0 %v3836_v63  ;;  %2842 = vmatprep.mubr.msk.bf16.mxu0 %vm3212_vm2, %v3210_v1 }
 0x908   : > { %2828 = vmatprep.subr.bf16.mxu0 %v3210_v1 }
 0x90b   : > { %2829 = vmatpush3.bf16.msra.mxu0 %v3846_v40 }
 0x90c   : > { %2830 = vmatprep.subr.bf16.mxu0 %v3210_v1 }
 0x90f   : > { %2831 = vmatpush3.bf16.msra.mxu0 %v3858_v45 }
 0x910   : > { %2832 = vmatprep.subr.bf16.mxu0 %v3210_v1 }
 0x913   : > { %2833 = vmatpush3.bf16.msra.mxu0 %v3868_v48 }
 0x914   : > { %2834 = vmatprep.subr.bf16.mxu0 %v3210_v1 }
 0x917   : > { %2835 = vmatpush3.bf16.msra.mxu0 %v3878_v56 }
 0x918   : > { %2836 = vmatprep.subr.bf16.mxu0 %v3210_v1 }
 0x91b   : > { %2837 = vmatpush3.bf16.msra.mxu0 %v3888_v16 }
 0x91c   : > { %2838 = vmatprep.subr.bf16.mxu0 %v3210_v1 }
 0x91f   : > { %2839 = vmatpush3.bf16.msra.mxu0 %v3898_v62 }
 0x920   : > { %2840 = vmatprep.subr.bf16.mxu0 %v3210_v1 }
 0x923   : > { %2841 = vmatpush3.bf16.msra.mxu0 %v3908_v38 }
 0x926   : > { %2843 = vmatmul.mubr.bf16.vlgmr.msra.gmra.mxu0 %v1916_v55 }
 0x99e   : > { %v1844_v44 = vpop.f32.mrf.mxu0 }
 0x9a0   : > { %v2778_v63 = vpop.f32.mrf.mxu0 }
 0x9a2   : > { %v1847_v40 = vpop.f32.mrf.mxu0 }
 0x9a4   : > { %v2779_v45 = vpop.f32.mrf.mxu0 }
 0x9a6   : > { %v1888_v48 = vpop.f32.mrf.mxu0 }
 0x9a7   : > { %v1889_v1 = vadd.f32 %v1888_v48, %v1844_v44 }
 0x9a8   : > { %v2784_v56 = vpop.f32.mrf.mxu0 }
 0x9a9   : > { %v2090_v50 = vmul.f32 %v1889_v1, %v3496_v11 }
 0x9aa   : > { %v1891_v16 = vpop.f32.mrf.mxu0 }
 0x9ab   : > { %v1892_v51 = vadd.f32 %v1891_v16, %v1847_v40 }
 0x9ac   : > { %v2785_v25 = vpop.f32.mrf.mxu0 }
 0x9ad   : > { %v2091_v33 = vmul.f32 %v1892_v51, %v3498_v12 }
 0x9c6   : > { %v1999_v61 = vpop.f32.mrf.mxu0 }
 0x9c7   : > { %v2041_v38 = vadd.f32 %v3951_v9, %v1999_v61 }
 0x9c8   : > { %v2804_v0 = vpop.f32.mrf.mxu0 }
 0x9ca   : > { %v2002_v62 = vpop.f32.mrf.mxu0 }
 0x9cb   : > { %v2044_v28 = vadd.f32 %v3958_v17, %v2002_v62 }
 0x9cc   : > { %v2805_v27 = vpop.f32.mrf.mxu0 }
 0x9e6   : > { %v2081_v23 = vpop.f32.mrf.mxu0 }
 0x9e7   : > { %v2088_v55 = vadd.f32 %v2081_v23, %v2041_v38 }
 0x9e8   : > { %v2844_v24 = vpop.f32.mrf.mxu0 }
 0x9e9   : > { %v2092_v29 = vadd.f32 %v2090_v50, %v2088_v55 }
 0x9ea   : > { %v2084_v32 = vpop.f32.mrf.mxu0 }
 0x9eb   : > { %v2101_v35 = vadd.f32 %v2298_v30, %v2092_v29  ;;  %v2089_v3 = vadd.f32 %v2084_v32, %v2044_v28 }
 0x9ec   : > { %v2845_v11 = vpop.f32.mrf.mxu0 }
 0x9ed   : > { %2103 = vst [vmem:[%s470_s21] sm:$0xff] %v2101_v35  ;;  %v2093_v13 = vadd.f32 %v2091_v33, %v2089_v3 }
 0x9ef   : > { %v2102_v12 = vadd.f32 %v2298_v30, %v2093_v13 }
 0x9f1   : > { %2104 = vst [vmem:[%s470_s21 + $0x8] sm:$0xff] %v2102_v12 }
 0x9f2   : > { %3136 = shalt.err (!%p3133_p3)
}
 0x9f3   : > { %s3137_s20 = scalar_lea.hbm %s4008_s15, 256  ;;  %s3141_s18 = scalar_lea.hbm %s4060_s10, 512 }
 0x9f4   : > { %p3138_p12 = scmp.ne.s32.totalorder %s4008_s15, %s3137_s20  ;;  %p3142_p2 = scmp.lt.s32.totalorder %s4008_s15, %s4060_s10 }
 0x9f5   : > { %p3143_p4 = scmp.lt.s32.totalorder %s3141_s18, %s3137_s20 }
 0x9f6   : > { %p3139_p10 = pnand %p3138_p12, %p3310_p5 }
 0x9f7   : > { %p3144_p9 = por %p3143_p4, %p3142_p2 }
 0x9f8   : > { %p3140_p1 = pneg %p3139_p10 }
 0x9fa   : > { %p3145_p8 = pnand %p3144_p9, %p3140_p1 }
 0x9fc   : > { %3148 = shalt.err (!%p3145_p8)
}
 0x9fd   : > { %s3215_s22 = smov 128   ;;  %s3216_s4 = smov 8  }
 0x9fe   : > { %2870 = dma.vmem_to_hbm [thread:$0]  (%p3310_p5), %s4003_s26, 256, %s4008_s15, %s4010_s30, %s3215_s22, %s3215_s22, %s3216_s4  }
 0x9ff PF: > { %p2907_p13 = scmp.ge.s32.totalorder %s3199_s16, 2  ;;  %s2134_s29 = sand.u32 1, %s3187_s13  }
 0xa00   : > { %s2135_s17 = scalar_lea.sflag [#allocation4], %s2134_s29 }
 0xa01   : > { %p2892_p7 = pnand %p2907_p13, %p3314_p6 }
 0xa03   : > { %p2893_p11 = pneg %p2892_p7 }
 0xa05   : > { %3182 = dma.done.wait (%p2893_p11), %s2135_s17, 256  }
 0xa06   : > { %3184 = vsyncadd (%p2893_p11), %s2135_s17, 4294967040  ;;  %s4080_s11 = sld [smem:[#allocation19_spill]]  ;;  %p24_p0 = scmp.ge.s32.totalorder %s3297_s19, 4  }
 0xa07   : > { %s4081_s15 = sld [smem:[#allocation20_spill]]  ;;  %s4082_s13 = smov %s3191_s14 }
 0xa08   : > { %s4084_s16 = smov %s3297_s19  ;;  %26 = sbr.rel (!%p24_p0) target bundleno = 9 (0x9), region = 126 }
 0xa0c   : > { %s4083_s14 = smov %s4080_s11 }
 0xa0d   :  { %2140 = vsyncpa [#allocation3], 1 }
 0xa0e   :  { %2142 = vsyncpa [#allocation3 + $0x1], 1 }
 0xa0f   :  { %2143 = vsyncpa [#allocation6], 1 }
 0xa10   :  { %2144 = vsyncpa [#allocation9], 1 }
 0xa11   :  { %2145 = vsyncpa [#allocation12], 1 }
 0xa12   :  { %2146 = vsyncpa [#allocation4], 1 }
 0xa13   :  { %2148 = vsyncpa [#allocation4 + $0x1], 1 }

</bundles_post_ra>
